<compile_context>
chip_gen: v5e
topology: v5e:2x2
jax: 0.10.0
libtpu: 0.0.40
codegen_flags: <defaults>
</compile_context>

<pallas_src>
import functools

import numpy as np
import jax
import jax.numpy as jnp
from jax.experimental import pallas as pl
from jax.experimental.pallas import tpu as pltpu

EPS = 1e-9


def get_concat_index(class_num):
    """Same pair enumeration as ContrastiveLoss.getConcatIndex."""
    res = [[], []]
    for index in range(class_num - 1):
        res[0] += [index for _ in range(class_num - index - 1)]
        res[1] += [i for i in range(index + 1, class_num)]
    return res


def _contrastive_kernel(x_ref, r_ref, l_ref, o_ref, *, gram_precision):
    """x_ref: (B, tc, D) features (original dtype, original layout).
    r_ref/l_ref: (B, P_pad) static 0/1 selection matrices (column p has a single
        1 at the pair's second / first batch index; padded columns are zero).
    o_ref: (tc, P_pad) f32 cosine distances, lane-dense."""
    B = x_ref.shape[0]
    tc = o_ref.shape[0]

    r = r_ref[...]  # (B, P_pad) f32
    l = l_ref[...]  # (B, P_pad) f32

    # Identity mask for extracting the Gram diagonal (hoisted out of the loop).
    row = jax.lax.broadcasted_iota(jnp.int32, (B, B), 0)
    col = jax.lax.broadcasted_iota(jnp.int32, (B, B), 1)
    eye = (row == col).astype(jnp.float32)

    for c in range(tc):  # static unroll over the class tile
        xc = x_ref[:, c, :]  # (B, D), original dtype

        # All-pairs dot products for this class on the MXU: gram[i, j] = x_i . x_j
        gram = jax.lax.dot_general(
            xc, xc,
            dimension_numbers=(((1,), (1,)), ((), ())),
            preferred_element_type=jnp.float32,
            precision=gram_precision,
        )  # (B, B) f32

        # Squared row norms from the Gram diagonal (cheaper than sum(x*x) over D).
        ge = gram * eye
        n_row = jnp.sum(ge, axis=1, keepdims=True)  # (B, 1): ||x_i||^2
        n_col = jnp.sum(ge, axis=0, keepdims=True)  # (1, B): ||x_j||^2
        prod = n_row * n_col                        # (B, B)

        # dot / max(sqrt(n_i*n_j), eps) == dot * rsqrt(max(n_i*n_j, eps^2))  (EUP)
        cos = gram * jax.lax.rsqrt(jnp.maximum(prod, EPS * EPS))  # (B, B) f32

        # Fused upper-triangle extraction, lane-dense:
        #   sel[i, p] = cos[i, j_p]   (tiny MXU matmul; HIGHEST keeps f32 exactness)
        #   dist[p]   = cos[i_p, j_p] (masked sublane reduce)
        sel = jax.lax.dot_general(
            cos, r,
            dimension_numbers=(((1,), (0,)), ((), ())),
            preferred_element_type=jnp.float32,
            precision=jax.lax.Precision.HIGHEST,
        )  # (B, P_pad)
        o_ref[c, :] = jnp.sum(sel * l, axis=0)  # (P_pad,)


def _pick_class_tile(C, B, D, P_pad, in_itemsize,
                     vmem_budget_bytes=16 * 1024 * 1024, unroll_cap=32):
    """Largest class tile that (a) is a legal block dim (multiple-of-8 divisor of C,
    or C itself), (b) keeps the in-kernel unroll small, and (c) keeps the
    double-buffered input+output working set within the budget (v7x-safe)."""
    d_pad = max(128, -(-D // 128) * 128)

    def blk_bytes(tc):
        tc_pad = -(-tc // 8) * 8
        return 2 * (B * tc_pad * d_pad * in_itemsize + tc_pad * P_pad * 4)

    cands = [t for t in range(8, C + 1, 8) if C % t == 0]
    if C not in cands:
        cands.append(C)  # full-axis block is always legal
    ok = [t for t in sorted(cands)
          if t <= unroll_cap and blk_bytes(t) <= vmem_budget_bytes]
    if ok:
        return ok[-1]
    # TODO(synk): for very large B*D even the smallest class tile exceeds the
    # budget; the (B, D)/(B, B) blocks would then also need tiling.
    return min(cands)


def contrastive_loss_forward(x, target, batch_size, reduce=None, size_average=None):
    """Pallas implementation of ContrastiveLoss.forward (reduce=None path).

    x:      (B, C, D) float (f32 or bf16)
    target: (B, C) values in {-1, 0, 1} (unused when reduce is None)
    returns distance: (P, C) float32, P = B*(B-1)//2
    """
    del target, size_average
    if reduce:
        # TODO(synk): the reduce branch uses data-dependent boolean selection,
        # randperm and sort with runtime-dependent output sizes; no clean
        # static-shape Pallas equivalent.
        raise NotImplementedError("reduce branch not implemented in Pallas")

    B, C, D = x.shape
    assert B == batch_size

    idx0, idx1 = get_concat_index(B)
    P = len(idx0)
    if P == 0:
        return jnp.zeros((0, C), jnp.float32)
    P_pad = max(128, -(-P // 128) * 128)

    # Static 0/1 selection matrices: column p selects the pair's (first, second)
    # batch index; padded columns stay zero so padded lanes are written as 0.
    l_np = np.zeros((B, P_pad), np.float32)
    r_np = np.zeros((B, P_pad), np.float32)
    l_np[np.asarray(idx0), np.arange(P)] = 1.0
    r_np[np.asarray(idx1), np.arange(P)] = 1.0
    l_sel = jnp.asarray(l_np)
    r_sel = jnp.asarray(r_np)

    tc = _pick_class_tile(C, B, D, P_pad, jnp.dtype(x.dtype).itemsize)
    grid = (C // tc,)

    gram_precision = (jax.lax.Precision.HIGHEST
                      if x.dtype == jnp.float32
                      else jax.lax.Precision.DEFAULT)

    out = pl.pallas_call(
        functools.partial(_contrastive_kernel, gram_precision=gram_precision),
        out_shape=jax.ShapeDtypeStruct((C, P_pad), jnp.float32),
        grid=grid,
        in_specs=[
            pl.BlockSpec((B, tc, D), lambda c: (0, c, 0)),     # x, original layout
            pl.BlockSpec((B, P_pad), lambda c: (0, 0)),        # second-index selector
            pl.BlockSpec((B, P_pad), lambda c: (0, 0)),        # first-index selector
        ],
        out_specs=pl.BlockSpec((tc, P_pad), lambda c: (c, 0)),
        compiler_params=pltpu.CompilerParams(
            dimension_semantics=("parallel",),     # classes are independent
            vmem_limit_bytes=48 * 1024 * 1024,
        ),
    )(x, r_sel, l_sel)

    # Tiny glue: trim pair padding and present the PyTorch (P, C) layout.
    return out[:, :P].T


if __name__ == "__main__":
    # Small shapes consistent with the module: batch=8, classNum=8, featureDim=128
    B, C, D = 8, 8, 128
    key = jax.random.PRNGKey(0)
    k1, k2 = jax.random.split(key)
    x = jax.random.normal(k1, (B, C, D), dtype=jnp.float32)
    target = jax.random.randint(k2, (B, C), -1, 2).astype(jnp.float32)  # {-1,0,1}

    dist = contrastive_loss_forward(x, target, batch_size=B)
    dist = jax.block_until_ready(dist)

    # Cross-check against a plain-JAX reference of the original formula.
    idx0, idx1 = get_concat_index(B)
    x1 = x[jnp.asarray(idx0)]
    x2 = x[jnp.asarray(idx1)]
    ref = jnp.sum(x1 * x2, -1) / jnp.maximum(
        jnp.sqrt(jnp.sum(x1 * x1, -1) * jnp.sum(x2 * x2, -1)), EPS
    )
    assert dist.shape == (B * (B - 1) // 2, C)
    assert jnp.allclose(dist, ref, atol=1e-5, rtol=1e-5), float(
        jnp.max(jnp.abs(dist - ref))
    )

    print("KERNEL_OK")
</pallas_src>

<mosaic_0001>
module attributes {stable_mosaic.version = 11 : i64} {
  func.func @_contrastive_kernel(%arg0: i32, %arg1: memref<8x8x128xf32, #tpu.memory_space<vmem>>, %arg2: memref<8x128xf32, #tpu.memory_space<vmem>>, %arg3: memref<8x128xf32, #tpu.memory_space<vmem>>, %arg4: memref<8x128xf32, #tpu.memory_space<vmem>>) attributes {dimension_semantics = [#tpu.dimension_semantics<parallel>], iteration_bounds = array<i64: 1>, scalar_prefetch = 0 : i64, scratch_operands = 0 : i64, tpu.core_type = #tpu.core_type<tc>, window_params = [{transform_indices = @transform_0, window_bounds = array<i64: 8, 8, 128>}, {pipeline_mode = #tpu.pipeline_mode<synchronous>, transform_indices = @transform_1, window_bounds = array<i64: 8, 128>}, {pipeline_mode = #tpu.pipeline_mode<synchronous>, transform_indices = @transform_2, window_bounds = array<i64: 8, 128>}, {transform_indices = @transform_3, window_bounds = array<i64: 8, 128>}]} {
    %c0 = arith.constant 0 : index
    %c0_0 = arith.constant 0 : index
    %0 = vector.load %arg2[%c0, %c0_0] : memref<8x128xf32, #tpu.memory_space<vmem>>, vector<8x128xf32>
    %c0_1 = arith.constant 0 : index
    %c0_2 = arith.constant 0 : index
    %1 = vector.load %arg3[%c0_1, %c0_2] : memref<8x128xf32, #tpu.memory_space<vmem>>, vector<8x128xf32>
    %2 = tpu.iota {dimensions = array<i32: 0>} : vector<8x8xi32>
    %3 = tpu.iota {dimensions = array<i32: 1>} : vector<8x8xi32>
    %4 = arith.cmpi eq, %2, %3 : vector<8x8xi32>
    %5 = arith.extui %4 : vector<8x8xi1> to vector<8x8xi32>
    %6 = arith.sitofp %5 : vector<8x8xi32> to vector<8x8xf32>
    %c0_3 = arith.constant 0 : index
    %c0_4 = arith.constant 0 : index
    %c0_5 = arith.constant 0 : index
    %7 = vector.load %arg1[%c0_3, %c0_4, %c0_5] : memref<8x8x128xf32, #tpu.memory_space<vmem>>, vector<8x1x128xf32>
    %8 = vector.shape_cast %7 : vector<8x1x128xf32> to vector<8x128xf32>
    %cst = arith.constant dense<0.000000e+00> : vector<8x8xf32>
    %9 = tpu.matmul %8, %8, %cst {dimension_numbers = #tpu.dot_dimension_numbers<[1], [1], [0], [0], [0, 0, 1, 0], [], []>, precision = #tpu.contract_precision<fp32>} : vector<8x128xf32>, vector<8x128xf32>, vector<8x8xf32> -> vector<8x8xf32>
    %10 = arith.mulf %9, %6 : vector<8x8xf32>
    %cst_6 = arith.constant dense<0.000000e+00> : vector<8xf32>
    %11 = vector.multi_reduction <add>, %10, %cst_6 [1] : vector<8x8xf32> to vector<8xf32>
    %12 = vector.shape_cast %11 : vector<8xf32> to vector<8x1xf32>
    %cst_7 = arith.constant dense<0.000000e+00> : vector<8xf32>
    %13 = vector.multi_reduction <add>, %10, %cst_7 [0] : vector<8x8xf32> to vector<8xf32>
    %14 = vector.shape_cast %13 : vector<8xf32> to vector<1x8xf32>
    %15 = vector.broadcast %12 : vector<8x1xf32> to vector<8x8xf32>
    %16 = vector.broadcast %14 : vector<1x8xf32> to vector<8x8xf32>
    %17 = arith.mulf %15, %16 : vector<8x8xf32>
    %cst_8 = arith.constant 1.000000e-18 : f32
    %18 = vector.broadcast %cst_8 : f32 to vector<8x8xf32>
    %19 = arith.maximumf %17, %18 : vector<8x8xf32>
    %20 = math.rsqrt %19 : vector<8x8xf32>
    %21 = arith.mulf %9, %20 : vector<8x8xf32>
    %cst_9 = arith.constant dense<0.000000e+00> : vector<8x128xf32>
    %22 = tpu.matmul %21, %0, %cst_9 {dimension_numbers = #tpu.dot_dimension_numbers<[1], [0], [0], [1], [0, 0, 1, 1], [], []>, precision = #tpu.contract_precision<fp32>} : vector<8x8xf32>, vector<8x128xf32>, vector<8x128xf32> -> vector<8x128xf32>
    %23 = arith.mulf %22, %1 : vector<8x128xf32>
    %cst_10 = arith.constant dense<0.000000e+00> : vector<128xf32>
    %24 = vector.multi_reduction <add>, %23, %cst_10 [0] : vector<8x128xf32> to vector<128xf32>
    %c0_11 = arith.constant 0 : index
    %c0_12 = arith.constant 0 : index
    %25 = vector.load %arg4[%c0_11, %c0_12] : memref<8x128xf32, #tpu.memory_space<vmem>>, vector<1x128xf32>
    %26 = vector.shape_cast %25 : vector<1x128xf32> to vector<128xf32>
    %27 = vector.shape_cast %24 : vector<128xf32> to vector<1x128xf32>
    tpu.vector_store %arg4[%c0_11, %c0_12], %27 {strides = array<i32>} : memref<8x128xf32, #tpu.memory_space<vmem>>, vector<1x128xf32>,
    %c0_13 = arith.constant 0 : index
    %c1 = arith.constant 1 : index
    %c0_14 = arith.constant 0 : index
    %28 = vector.load %arg1[%c0_13, %c1, %c0_14] : memref<8x8x128xf32, #tpu.memory_space<vmem>>, vector<8x1x128xf32>
    %29 = vector.shape_cast %28 : vector<8x1x128xf32> to vector<8x128xf32>
    %cst_15 = arith.constant dense<0.000000e+00> : vector<8x8xf32>
    %30 = tpu.matmul %29, %29, %cst_15 {dimension_numbers = #tpu.dot_dimension_numbers<[1], [1], [0], [0], [0, 0, 1, 0], [], []>, precision = #tpu.contract_precision<fp32>} : vector<8x128xf32>, vector<8x128xf32>, vector<8x8xf32> -> vector<8x8xf32>
    %31 = arith.mulf %30, %6 : vector<8x8xf32>
    %cst_16 = arith.constant dense<0.000000e+00> : vector<8xf32>
    %32 = vector.multi_reduction <add>, %31, %cst_16 [1] : vector<8x8xf32> to vector<8xf32>
    %33 = vector.shape_cast %32 : vector<8xf32> to vector<8x1xf32>
    %cst_17 = arith.constant dense<0.000000e+00> : vector<8xf32>
    %34 = vector.multi_reduction <add>, %31, %cst_17 [0] : vector<8x8xf32> to vector<8xf32>
    %35 = vector.shape_cast %34 : vector<8xf32> to vector<1x8xf32>
    %36 = vector.broadcast %33 : vector<8x1xf32> to vector<8x8xf32>
    %37 = vector.broadcast %35 : vector<1x8xf32> to vector<8x8xf32>
    %38 = arith.mulf %36, %37 : vector<8x8xf32>
    %cst_18 = arith.constant 1.000000e-18 : f32
    %39 = vector.broadcast %cst_18 : f32 to vector<8x8xf32>
    %40 = arith.maximumf %38, %39 : vector<8x8xf32>
    %41 = math.rsqrt %40 : vector<8x8xf32>
    %42 = arith.mulf %30, %41 : vector<8x8xf32>
    %cst_19 = arith.constant dense<0.000000e+00> : vector<8x128xf32>
    %43 = tpu.matmul %42, %0, %cst_19 {dimension_numbers = #tpu.dot_dimension_numbers<[1], [0], [0], [1], [0, 0, 1, 1], [], []>, precision = #tpu.contract_precision<fp32>} : vector<8x8xf32>, vector<8x128xf32>, vector<8x128xf32> -> vector<8x128xf32>
    %44 = arith.mulf %43, %1 : vector<8x128xf32>
    %cst_20 = arith.constant dense<0.000000e+00> : vector<128xf32>
    %45 = vector.multi_reduction <add>, %44, %cst_20 [0] : vector<8x128xf32> to vector<128xf32>
    %c1_21 = arith.constant 1 : index
    %c0_22 = arith.constant 0 : index
    %46 = vector.load %arg4[%c1_21, %c0_22] : memref<8x128xf32, #tpu.memory_space<vmem>>, vector<1x128xf32>
    %47 = vector.shape_cast %46 : vector<1x128xf32> to vector<128xf32>
    %48 = vector.shape_cast %45 : vector<128xf32> to vector<1x128xf32>
    tpu.vector_store %arg4[%c1_21, %c0_22], %48 {strides = array<i32>} : memref<8x128xf32, #tpu.memory_space<vmem>>, vector<1x128xf32>,
    %c0_23 = arith.constant 0 : index
    %c2 = arith.constant 2 : index
    %c0_24 = arith.constant 0 : index
    %49 = vector.load %arg1[%c0_23, %c2, %c0_24] : memref<8x8x128xf32, #tpu.memory_space<vmem>>, vector<8x1x128xf32>
    %50 = vector.shape_cast %49 : vector<8x1x128xf32> to vector<8x128xf32>
    %cst_25 = arith.constant dense<0.000000e+00> : vector<8x8xf32>
    %51 = tpu.matmul %50, %50, %cst_25 {dimension_numbers = #tpu.dot_dimension_numbers<[1], [1], [0], [0], [0, 0, 1, 0], [], []>, precision = #tpu.contract_precision<fp32>} : vector<8x128xf32>, vector<8x128xf32>, vector<8x8xf32> -> vector<8x8xf32>
    %52 = arith.mulf %51, %6 : vector<8x8xf32>
    %cst_26 = arith.constant dense<0.000000e+00> : vector<8xf32>
    %53 = vector.multi_reduction <add>, %52, %cst_26 [1] : vector<8x8xf32> to vector<8xf32>
    %54 = vector.shape_cast %53 : vector<8xf32> to vector<8x1xf32>
    %cst_27 = arith.constant dense<0.000000e+00> : vector<8xf32>
    %55 = vector.multi_reduction <add>, %52, %cst_27 [0] : vector<8x8xf32> to vector<8xf32>
    %56 = vector.shape_cast %55 : vector<8xf32> to vector<1x8xf32>
    %57 = vector.broadcast %54 : vector<8x1xf32> to vector<8x8xf32>
    %58 = vector.broadcast %56 : vector<1x8xf32> to vector<8x8xf32>
    %59 = arith.mulf %57, %58 : vector<8x8xf32>
    %cst_28 = arith.constant 1.000000e-18 : f32
    %60 = vector.broadcast %cst_28 : f32 to vector<8x8xf32>
    %61 = arith.maximumf %59, %60 : vector<8x8xf32>
    %62 = math.rsqrt %61 : vector<8x8xf32>
    %63 = arith.mulf %51, %62 : vector<8x8xf32>
    %cst_29 = arith.constant dense<0.000000e+00> : vector<8x128xf32>
    %64 = tpu.matmul %63, %0, %cst_29 {dimension_numbers = #tpu.dot_dimension_numbers<[1], [0], [0], [1], [0, 0, 1, 1], [], []>, precision = #tpu.contract_precision<fp32>} : vector<8x8xf32>, vector<8x128xf32>, vector<8x128xf32> -> vector<8x128xf32>
    %65 = arith.mulf %64, %1 : vector<8x128xf32>
    %cst_30 = arith.constant dense<0.000000e+00> : vector<128xf32>
    %66 = vector.multi_reduction <add>, %65, %cst_30 [0] : vector<8x128xf32> to vector<128xf32>
    %c2_31 = arith.constant 2 : index
    %c0_32 = arith.constant 0 : index
    %67 = vector.load %arg4[%c2_31, %c0_32] : memref<8x128xf32, #tpu.memory_space<vmem>>, vector<1x128xf32>
    %68 = vector.shape_cast %67 : vector<1x128xf32> to vector<128xf32>
    %69 = vector.shape_cast %66 : vector<128xf32> to vector<1x128xf32>
    tpu.vector_store %arg4[%c2_31, %c0_32], %69 {strides = array<i32>} : memref<8x128xf32, #tpu.memory_space<vmem>>, vector<1x128xf32>,
    %c0_33 = arith.constant 0 : index
    %c3 = arith.constant 3 : index
    %c0_34 = arith.constant 0 : index
    %70 = vector.load %arg1[%c0_33, %c3, %c0_34] : memref<8x8x128xf32, #tpu.memory_space<vmem>>, vector<8x1x128xf32>
    %71 = vector.shape_cast %70 : vector<8x1x128xf32> to vector<8x128xf32>
    %cst_35 = arith.constant dense<0.000000e+00> : vector<8x8xf32>
    %72 = tpu.matmul %71, %71, %cst_35 {dimension_numbers = #tpu.dot_dimension_numbers<[1], [1], [0], [0], [0, 0, 1, 0], [], []>, precision = #tpu.contract_precision<fp32>} : vector<8x128xf32>, vector<8x128xf32>, vector<8x8xf32> -> vector<8x8xf32>
    %73 = arith.mulf %72, %6 : vector<8x8xf32>
    %cst_36 = arith.constant dense<0.000000e+00> : vector<8xf32>
    %74 = vector.multi_reduction <add>, %73, %cst_36 [1] : vector<8x8xf32> to vector<8xf32>
    %75 = vector.shape_cast %74 : vector<8xf32> to vector<8x1xf32>
    %cst_37 = arith.constant dense<0.000000e+00> : vector<8xf32>
    %76 = vector.multi_reduction <add>, %73, %cst_37 [0] : vector<8x8xf32> to vector<8xf32>
    %77 = vector.shape_cast %76 : vector<8xf32> to vector<1x8xf32>
    %78 = vector.broadcast %75 : vector<8x1xf32> to vector<8x8xf32>
    %79 = vector.broadcast %77 : vector<1x8xf32> to vector<8x8xf32>
    %80 = arith.mulf %78, %79 : vector<8x8xf32>
    %cst_38 = arith.constant 1.000000e-18 : f32
    %81 = vector.broadcast %cst_38 : f32 to vector<8x8xf32>
    %82 = arith.maximumf %80, %81 : vector<8x8xf32>
    %83 = math.rsqrt %82 : vector<8x8xf32>
    %84 = arith.mulf %72, %83 : vector<8x8xf32>
    %cst_39 = arith.constant dense<0.000000e+00> : vector<8x128xf32>
    %85 = tpu.matmul %84, %0, %cst_39 {dimension_numbers = #tpu.dot_dimension_numbers<[1], [0], [0], [1], [0, 0, 1, 1], [], []>, precision = #tpu.contract_precision<fp32>} : vector<8x8xf32>, vector<8x128xf32>, vector<8x128xf32> -> vector<8x128xf32>
    %86 = arith.mulf %85, %1 : vector<8x128xf32>
    %cst_40 = arith.constant dense<0.000000e+00> : vector<128xf32>
    %87 = vector.multi_reduction <add>, %86, %cst_40 [0] : vector<8x128xf32> to vector<128xf32>
    %c3_41 = arith.constant 3 : index
    %c0_42 = arith.constant 0 : index
    %88 = vector.load %arg4[%c3_41, %c0_42] : memref<8x128xf32, #tpu.memory_space<vmem>>, vector<1x128xf32>
    %89 = vector.shape_cast %88 : vector<1x128xf32> to vector<128xf32>
    %90 = vector.shape_cast %87 : vector<128xf32> to vector<1x128xf32>
    tpu.vector_store %arg4[%c3_41, %c0_42], %90 {strides = array<i32>} : memref<8x128xf32, #tpu.memory_space<vmem>>, vector<1x128xf32>,
    %c0_43 = arith.constant 0 : index
    %c4 = arith.constant 4 : index
    %c0_44 = arith.constant 0 : index
    %91 = vector.load %arg1[%c0_43, %c4, %c0_44] : memref<8x8x128xf32, #tpu.memory_space<vmem>>, vector<8x1x128xf32>
    %92 = vector.shape_cast %91 : vector<8x1x128xf32> to vector<8x128xf32>
    %cst_45 = arith.constant dense<0.000000e+00> : vector<8x8xf32>
    %93 = tpu.matmul %92, %92, %cst_45 {dimension_numbers = #tpu.dot_dimension_numbers<[1], [1], [0], [0], [0, 0, 1, 0], [], []>, precision = #tpu.contract_precision<fp32>} : vector<8x128xf32>, vector<8x128xf32>, vector<8x8xf32> -> vector<8x8xf32>
    %94 = arith.mulf %93, %6 : vector<8x8xf32>
    %cst_46 = arith.constant dense<0.000000e+00> : vector<8xf32>
    %95 = vector.multi_reduction <add>, %94, %cst_46 [1] : vector<8x8xf32> to vector<8xf32>
    %96 = vector.shape_cast %95 : vector<8xf32> to vector<8x1xf32>
    %cst_47 = arith.constant dense<0.000000e+00> : vector<8xf32>
    %97 = vector.multi_reduction <add>, %94, %cst_47 [0] : vector<8x8xf32> to vector<8xf32>
    %98 = vector.shape_cast %97 : vector<8xf32> to vector<1x8xf32>
    %99 = vector.broadcast %96 : vector<8x1xf32> to vector<8x8xf32>
    %100 = vector.broadcast %98 : vector<1x8xf32> to vector<8x8xf32>
    %101 = arith.mulf %99, %100 : vector<8x8xf32>
    %cst_48 = arith.constant 1.000000e-18 : f32
    %102 = vector.broadcast %cst_48 : f32 to vector<8x8xf32>
    %103 = arith.maximumf %101, %102 : vector<8x8xf32>
    %104 = math.rsqrt %103 : vector<8x8xf32>
    %105 = arith.mulf %93, %104 : vector<8x8xf32>
    %cst_49 = arith.constant dense<0.000000e+00> : vector<8x128xf32>
    %106 = tpu.matmul %105, %0, %cst_49 {dimension_numbers = #tpu.dot_dimension_numbers<[1], [0], [0], [1], [0, 0, 1, 1], [], []>, precision = #tpu.contract_precision<fp32>} : vector<8x8xf32>, vector<8x128xf32>, vector<8x128xf32> -> vector<8x128xf32>
    %107 = arith.mulf %106, %1 : vector<8x128xf32>
    %cst_50 = arith.constant dense<0.000000e+00> : vector<128xf32>
    %108 = vector.multi_reduction <add>, %107, %cst_50 [0] : vector<8x128xf32> to vector<128xf32>
    %c4_51 = arith.constant 4 : index
    %c0_52 = arith.constant 0 : index
    %109 = vector.load %arg4[%c4_51, %c0_52] : memref<8x128xf32, #tpu.memory_space<vmem>>, vector<1x128xf32>
    %110 = vector.shape_cast %109 : vector<1x128xf32> to vector<128xf32>
    %111 = vector.shape_cast %108 : vector<128xf32> to vector<1x128xf32>
    tpu.vector_store %arg4[%c4_51, %c0_52], %111 {strides = array<i32>} : memref<8x128xf32, #tpu.memory_space<vmem>>, vector<1x128xf32>,
    %c0_53 = arith.constant 0 : index
    %c5 = arith.constant 5 : index
    %c0_54 = arith.constant 0 : index
    %112 = vector.load %arg1[%c0_53, %c5, %c0_54] : memref<8x8x128xf32, #tpu.memory_space<vmem>>, vector<8x1x128xf32>
    %113 = vector.shape_cast %112 : vector<8x1x128xf32> to vector<8x128xf32>
    %cst_55 = arith.constant dense<0.000000e+00> : vector<8x8xf32>
    %114 = tpu.matmul %113, %113, %cst_55 {dimension_numbers = #tpu.dot_dimension_numbers<[1], [1], [0], [0], [0, 0, 1, 0], [], []>, precision = #tpu.contract_precision<fp32>} : vector<8x128xf32>, vector<8x128xf32>, vector<8x8xf32> -> vector<8x8xf32>
    %115 = arith.mulf %114, %6 : vector<8x8xf32>
    %cst_56 = arith.constant dense<0.000000e+00> : vector<8xf32>
    %116 = vector.multi_reduction <add>, %115, %cst_56 [1] : vector<8x8xf32> to vector<8xf32>
    %117 = vector.shape_cast %116 : vector<8xf32> to vector<8x1xf32>
    %cst_57 = arith.constant dense<0.000000e+00> : vector<8xf32>
    %118 = vector.multi_reduction <add>, %115, %cst_57 [0] : vector<8x8xf32> to vector<8xf32>
    %119 = vector.shape_cast %118 : vector<8xf32> to vector<1x8xf32>
    %120 = vector.broadcast %117 : vector<8x1xf32> to vector<8x8xf32>
    %121 = vector.broadcast %119 : vector<1x8xf32> to vector<8x8xf32>
    %122 = arith.mulf %120, %121 : vector<8x8xf32>
    %cst_58 = arith.constant 1.000000e-18 : f32
    %123 = vector.broadcast %cst_58 : f32 to vector<8x8xf32>
    %124 = arith.maximumf %122, %123 : vector<8x8xf32>
    %125 = math.rsqrt %124 : vector<8x8xf32>
    %126 = arith.mulf %114, %125 : vector<8x8xf32>
    %cst_59 = arith.constant dense<0.000000e+00> : vector<8x128xf32>
    %127 = tpu.matmul %126, %0, %cst_59 {dimension_numbers = #tpu.dot_dimension_numbers<[1], [0], [0], [1], [0, 0, 1, 1], [], []>, precision = #tpu.contract_precision<fp32>} : vector<8x8xf32>, vector<8x128xf32>, vector<8x128xf32> -> vector<8x128xf32>
    %128 = arith.mulf %127, %1 : vector<8x128xf32>
    %cst_60 = arith.constant dense<0.000000e+00> : vector<128xf32>
    %129 = vector.multi_reduction <add>, %128, %cst_60 [0] : vector<8x128xf32> to vector<128xf32>
    %c5_61 = arith.constant 5 : index
    %c0_62 = arith.constant 0 : index
    %130 = vector.load %arg4[%c5_61, %c0_62] : memref<8x128xf32, #tpu.memory_space<vmem>>, vector<1x128xf32>
    %131 = vector.shape_cast %130 : vector<1x128xf32> to vector<128xf32>
    %132 = vector.shape_cast %129 : vector<128xf32> to vector<1x128xf32>
    tpu.vector_store %arg4[%c5_61, %c0_62], %132 {strides = array<i32>} : memref<8x128xf32, #tpu.memory_space<vmem>>, vector<1x128xf32>,
    %c0_63 = arith.constant 0 : index
    %c6 = arith.constant 6 : index
    %c0_64 = arith.constant 0 : index
    %133 = vector.load %arg1[%c0_63, %c6, %c0_64] : memref<8x8x128xf32, #tpu.memory_space<vmem>>, vector<8x1x128xf32>
    %134 = vector.shape_cast %133 : vector<8x1x128xf32> to vector<8x128xf32>
    %cst_65 = arith.constant dense<0.000000e+00> : vector<8x8xf32>
    %135 = tpu.matmul %134, %134, %cst_65 {dimension_numbers = #tpu.dot_dimension_numbers<[1], [1], [0], [0], [0, 0, 1, 0], [], []>, precision = #tpu.contract_precision<fp32>} : vector<8x128xf32>, vector<8x128xf32>, vector<8x8xf32> -> vector<8x8xf32>
    %136 = arith.mulf %135, %6 : vector<8x8xf32>
    %cst_66 = arith.constant dense<0.000000e+00> : vector<8xf32>
    %137 = vector.multi_reduction <add>, %136, %cst_66 [1] : vector<8x8xf32> to vector<8xf32>
    %138 = vector.shape_cast %137 : vector<8xf32> to vector<8x1xf32>
    %cst_67 = arith.constant dense<0.000000e+00> : vector<8xf32>
    %139 = vector.multi_reduction <add>, %136, %cst_67 [0] : vector<8x8xf32> to vector<8xf32>
    %140 = vector.shape_cast %139 : vector<8xf32> to vector<1x8xf32>
    %141 = vector.broadcast %138 : vector<8x1xf32> to vector<8x8xf32>
    %142 = vector.broadcast %140 : vector<1x8xf32> to vector<8x8xf32>
    %143 = arith.mulf %141, %142 : vector<8x8xf32>
    %cst_68 = arith.constant 1.000000e-18 : f32
    %144 = vector.broadcast %cst_68 : f32 to vector<8x8xf32>
    %145 = arith.maximumf %143, %144 : vector<8x8xf32>
    %146 = math.rsqrt %145 : vector<8x8xf32>
    %147 = arith.mulf %135, %146 : vector<8x8xf32>
    %cst_69 = arith.constant dense<0.000000e+00> : vector<8x128xf32>
    %148 = tpu.matmul %147, %0, %cst_69 {dimension_numbers = #tpu.dot_dimension_numbers<[1], [0], [0], [1], [0, 0, 1, 1], [], []>, precision = #tpu.contract_precision<fp32>} : vector<8x8xf32>, vector<8x128xf32>, vector<8x128xf32> -> vector<8x128xf32>
    %149 = arith.mulf %148, %1 : vector<8x128xf32>
    %cst_70 = arith.constant dense<0.000000e+00> : vector<128xf32>
    %150 = vector.multi_reduction <add>, %149, %cst_70 [0] : vector<8x128xf32> to vector<128xf32>
    %c6_71 = arith.constant 6 : index
    %c0_72 = arith.constant 0 : index
    %151 = vector.load %arg4[%c6_71, %c0_72] : memref<8x128xf32, #tpu.memory_space<vmem>>, vector<1x128xf32>
    %152 = vector.shape_cast %151 : vector<1x128xf32> to vector<128xf32>
    %153 = vector.shape_cast %150 : vector<128xf32> to vector<1x128xf32>
    tpu.vector_store %arg4[%c6_71, %c0_72], %153 {strides = array<i32>} : memref<8x128xf32, #tpu.memory_space<vmem>>, vector<1x128xf32>,
    %c0_73 = arith.constant 0 : index
    %c7 = arith.constant 7 : index
    %c0_74 = arith.constant 0 : index
    %154 = vector.load %arg1[%c0_73, %c7, %c0_74] : memref<8x8x128xf32, #tpu.memory_space<vmem>>, vector<8x1x128xf32>
    %155 = vector.shape_cast %154 : vector<8x1x128xf32> to vector<8x128xf32>
    %cst_75 = arith.constant dense<0.000000e+00> : vector<8x8xf32>
    %156 = tpu.matmul %155, %155, %cst_75 {dimension_numbers = #tpu.dot_dimension_numbers<[1], [1], [0], [0], [0, 0, 1, 0], [], []>, precision = #tpu.contract_precision<fp32>} : vector<8x128xf32>, vector<8x128xf32>, vector<8x8xf32> -> vector<8x8xf32>
    %157 = arith.mulf %156, %6 : vector<8x8xf32>
    %cst_76 = arith.constant dense<0.000000e+00> : vector<8xf32>
    %158 = vector.multi_reduction <add>, %157, %cst_76 [1] : vector<8x8xf32> to vector<8xf32>
    %159 = vector.shape_cast %158 : vector<8xf32> to vector<8x1xf32>
    %cst_77 = arith.constant dense<0.000000e+00> : vector<8xf32>
    %160 = vector.multi_reduction <add>, %157, %cst_77 [0] : vector<8x8xf32> to vector<8xf32>
    %161 = vector.shape_cast %160 : vector<8xf32> to vector<1x8xf32>
    %162 = vector.broadcast %159 : vector<8x1xf32> to vector<8x8xf32>
    %163 = vector.broadcast %161 : vector<1x8xf32> to vector<8x8xf32>
    %164 = arith.mulf %162, %163 : vector<8x8xf32>
    %cst_78 = arith.constant 1.000000e-18 : f32
    %165 = vector.broadcast %cst_78 : f32 to vector<8x8xf32>
    %166 = arith.maximumf %164, %165 : vector<8x8xf32>
    %167 = math.rsqrt %166 : vector<8x8xf32>
    %168 = arith.mulf %156, %167 : vector<8x8xf32>
    %cst_79 = arith.constant dense<0.000000e+00> : vector<8x128xf32>
    %169 = tpu.matmul %168, %0, %cst_79 {dimension_numbers = #tpu.dot_dimension_numbers<[1], [0], [0], [1], [0, 0, 1, 1], [], []>, precision = #tpu.contract_precision<fp32>} : vector<8x8xf32>, vector<8x128xf32>, vector<8x128xf32> -> vector<8x128xf32>
    %170 = arith.mulf %169, %1 : vector<8x128xf32>
    %cst_80 = arith.constant dense<0.000000e+00> : vector<128xf32>
    %171 = vector.multi_reduction <add>, %170, %cst_80 [0] : vector<8x128xf32> to vector<128xf32>
    %c7_81 = arith.constant 7 : index
    %c0_82 = arith.constant 0 : index
    %172 = vector.load %arg4[%c7_81, %c0_82] : memref<8x128xf32, #tpu.memory_space<vmem>>, vector<1x128xf32>
    %173 = vector.shape_cast %172 : vector<1x128xf32> to vector<128xf32>
    %174 = vector.shape_cast %171 : vector<128xf32> to vector<1x128xf32>
    tpu.vector_store %arg4[%c7_81, %c0_82], %174 {strides = array<i32>} : memref<8x128xf32, #tpu.memory_space<vmem>>, vector<1x128xf32>,
    return
  }
  func.func @transform_0(%arg0: i32) -> (i32, i32, i32) {
    %c0_i32 = arith.constant 0 : i32
    %c0_i32_0 = arith.constant 0 : i32
    %c0_i32_1 = arith.constant 0 : i32
    return %c0_i32, %arg0, %c0_i32_0 : i32, i32, i32
  }
  func.func @transform_1(%arg0: i32) -> (i32, i32) {
    %c0_i32 = arith.constant 0 : i32
    %c0_i32_0 = arith.constant 0 : i32
    %c0_i32_1 = arith.constant 0 : i32
    return %c0_i32, %c0_i32_0 : i32, i32
  }
  func.func @transform_2(%arg0: i32) -> (i32, i32) {
    %c0_i32 = arith.constant 0 : i32
    %c0_i32_0 = arith.constant 0 : i32
    %c0_i32_1 = arith.constant 0 : i32
    return %c0_i32, %c0_i32_0 : i32, i32
  }
  func.func @transform_3(%arg0: i32) -> (i32, i32) {
    %c0_i32 = arith.constant 0 : i32
    %c0_i32_0 = arith.constant 0 : i32
    return %arg0, %c0_i32 : i32, i32
  }
}

</mosaic_0001>

<bundles_post_ra>
// kernel: tpu_custom_call.1
= control target key start
LH: loop header
LB: loop body
LE: loop exit
PB: predicated region body
PF: predicated region fallthrough
CT: control target
= control target key end

     0   :  { %8 = vsyncpa [#allocation3], 0  ;;  %s3273_s0 = inlined_call_operand.hbm [shape: f32[8,8,128], index: 0, kind: input, shape index: {}]   ;;  %s3274_s1 = inlined_call_operand.hbm [shape: f32[8,128], index: 1, kind: input, shape index: {}]   ;;  %s3275_s2 = inlined_call_operand.hbm [shape: f32[8,128], index: 2, kind: input, shape index: {}]   ;;  %s3276_s3 = inlined_call_operand.hbm [shape: f32[8,128], index: 3, kind: output, shape index: {}]  }
   0x1   :  { %9 = vsyncpa [#allocation6], 0  ;;  %s29_s14 = sshll.u32 %s3274_s1, 4  ;;  %s30_s14 = int_to_ptr.hbm [resolvable:$true] %s29_s14 }
   0x2   :  { %10 = vsyncpa [#allocation4], 0  ;;  %s3076_s15 = smov [#allocation5]   ;;  %s15_s19 = sshll.u32 %s3273_s0, 4  ;;  %s16_s19 = int_to_ptr.hbm [resolvable:$true] %s15_s19 }
   0x3   :  { %s31_s16 = sshll.u32 %s3076_s15, 4  ;;  %s3077_s20 = smov [#allocation2]   ;;  %s32_s16 = int_to_ptr.vmem [resolvable:$true] %s31_s16 }
   0x4   :  { %34 = dma.hbm_to_vmem [thread:$0]  %s30_s14, 128, %s32_s16, [#allocation6]  }
   0x5   :  { %s17_s21 = sshll.u32 %s3077_s20, 4  ;;  %s3078_s22 = smov 128   ;;  %s18_s21 = int_to_ptr.vmem [resolvable:$true] %s17_s21 }
   0x6   :  { %s3079_s23 = smov 8   ;;  %s40_s1 = sshll.u32 %s3275_s2, 4  ;;  %s41_s1 = int_to_ptr.hbm [resolvable:$true] %s40_s1 }
   0x7   :  { %23 = dma.hbm_to_vmem [thread:$0]  %s16_s19, 1024, %s18_s21, [#allocation3], %s3078_s22, %s3078_s22, %s3079_s23  }
   0x8   :  { %s3080_s26 = smov [#allocation7]  }
   0x9   :  { %s42_s27 = sshll.u32 %s3080_s26, 4  ;;  %s43_s27 = int_to_ptr.vmem [resolvable:$true] %s42_s27 }
   0xa   :  { %45 = dma.hbm_to_vmem [thread:$0]  %s41_s1, 128, %s43_s27, [#allocation6]  }
   0xb   :  { %3070 = dma.done.wait [#allocation3], 1024  }
   0xc   :  { %3071 = vsyncadd [#allocation3], 4294966272 }
   0xd   :  { %3072 = dma.done.wait [#allocation6], 256  }
   0xe   :  { %3073 = vsyncadd [#allocation6], 4294967040  ;;  %vm84_vm0 = vcmask 1041409   ;;  %v67_v0 = vld [vmem:[#allocation2] sm:$0x1]  ;;  %vm87_vm1 = vcmask 1042434   ;;  %v60_v28 = vlaneseq }
   0xf   :  { %v68_v1 = vld [vmem:[#allocation2 + $0x8] sm:$0x1]  ;;  %v69_v2 = vld [vmem:[#allocation2 + $0x10] sm:$0x1]  ;;  %v70_v3 = vld [vmem:[#allocation2 + $0x18] sm:$0x1] }
  0x10   :  { %v71_v4 = vld [vmem:[#allocation2 + $0x20] sm:$0x1]  ;;  %v72_v5 = vld [vmem:[#allocation2 + $0x28] sm:$0x1]  ;;  %v73_v6 = vld [vmem:[#allocation2 + $0x30] sm:$0x1] }
  0x11   :  { %v83_v7 = vrot.slane %v68_v1, 7  ;;  %v86_v8 = vrot.slane %v69_v2, 6  ;;  %v74_v9 = vld [vmem:[#allocation2 + $0x38] sm:$0x1]  ;;  %v89_v10 = vrot.slane %v70_v3, 5  ;;  %vm90_vm2 = vcmask 1043459  }
  0x12   :  { %v92_v11 = vrot.slane %v71_v4, 4  ;;  %vm93_vm3 = vcmask 1044484   ;;  %v95_v13 = vrot.slane %v72_v5, 3  ;;  %vm96_vm4 = vcmask 1045509   ;;  %v58_v47 = vld [vmem:[#allocation5] sm:$0xff]  ;;  %s3082_s0 = smov [#allocation8]  }
  0x13   :  { %v85_v12 = vsel %vm84_vm0, %v83_v7, %v67_v0  ;;  %v98_v15 = vrot.slane %v73_v6, 2  ;;  %vm99_vm5 = vcmask 1046534   ;;  %v101_v17 = vrot.slane %v74_v9, 1  ;;  %v433_v57 = vld [vmem:[#allocation2 + $0x9] sm:$0x1]  ;;  %s2936_s2 = sshll.u32 %s3082_s0, 4  ;;  %s2937_s2 = int_to_ptr.vmem [resolvable:$true] %s2936_s2 }
  0x14   :  { %v88_v14 = vsel %vm87_vm1, %v86_v8, %v85_v12  ;;  %vm102_vm6 = vcmask 1047559   ;;  %v61_v32 = vshrl.u32 %v60_v28, 7  ;;  %v63_v33 = vand.u32 127, %v60_v28  ;;  %v434_v59 = vld [vmem:[#allocation2 + $0x11] sm:$0x1]  ;;  %s2938_s30 = sshll.u32 %s3276_s3, 4  ;;  %s2939_s30 = int_to_ptr.hbm [resolvable:$true] %s2938_s30 }
  0x15   :  { %v91_v16 = vsel %vm90_vm2, %v89_v10, %v88_v14  ;;  %v3081_v39 = vmov 0.0   ;;  %vm252_vm8 = vcmask 64512   ;;  %v3126_v48 = vand.u32 4294901760, %v58_v47  ;;  %v432_v62 = vld [vmem:[#allocation2 + $0x1] sm:$0x1] }
  0x16   :  { %v94_v18 = vsel %vm93_vm3, %v92_v11, %v91_v16  ;;  %vm64_vm7 = vcmp.eq.s32.totalorder %v61_v32, %v63_v33  ;;  %v448_v60 = vrot.slane %v433_v57, 7  ;;  %v435_v63 = vld [vmem:[#allocation2 + $0x19] sm:$0x1]  ;;  %v450_v0 = vrot.slane %v434_v59, 6  ;;  %v436_v1 = vld [vmem:[#allocation2 + $0x21] sm:$0x1] }
  0x17   :  { %v97_v19 = vsel %vm96_vm4, %v95_v13, %v94_v18  ;;  %v3119_v40 = vsel %vm64_vm7, 1.0, %v3081_v39  ;;  %v3129_v50 = vsub.f32 %v58_v47, %v3126_v48  ;;  %v452_v3 = vrot.slane %v435_v63, 5  ;;  %v437_v5 = vld [vmem:[#allocation2 + $0x29] sm:$0x1]  ;;  %v438_v8 = vld [vmem:[#allocation2 + $0x31] sm:$0x1] }
  0x18   :  { %v100_v20 = vsel %vm99_vm5, %v98_v15, %v97_v19  ;;  %v449_v2 = vsel %vm84_vm0, %v448_v60, %v432_v62  ;;  %v454_v7 = vrot.slane %v436_v1, 4  ;;  %v456_v10 = vrot.slane %v437_v5, 3  ;;  %v439_v11 = vld [vmem:[#allocation2 + $0x39] sm:$0x1] }
  0x19   :  { %v103_v21 = vsel %vm102_vm6, %v101_v17, %v100_v20  ;;  %v3134_v51 = vand.u32 4294901760, %v3129_v50  ;;  %v451_v6 = vsel %vm87_vm1, %v450_v0, %v449_v2  ;;  %v458_v13 = vrot.slane %v438_v8, 2 }
  0x1a   :  { %v120_v22 = vand.u32 4294901760, %v103_v21  ;;  %v453_v9 = vsel %vm90_vm2, %v452_v3, %v451_v6  ;;  %v460_v15 = vrot.slane %v439_v11, 1 }
  0x1b   :  { %v322_v53 = vsub.f32 %v3129_v50, %v3134_v51  ;;  %v455_v12 = vsel %vm93_vm3, %v454_v7, %v453_v9 }
  0x1c   :  { %v123_v23 = vsub.f32 %v103_v21, %v120_v22  ;;  %121 = vmatpush.xpose.msra.mxu0 %v120_v22  ;;  %197 = vmatpush.xpose.msra.mxu3 %v120_v22  ;;  %v457_v14 = vsel %vm96_vm4, %v456_v10, %v455_v12 }
  0x1d   :  { %v3140_v54 = vand.u32 4294901760, %v322_v53  ;;  %v459_v16 = vsel %vm99_vm5, %v458_v13, %v457_v14 }
  0x1e   :  { %174 = vmatpush.xpose.msra.mxu2 %v123_v23  ;;  %v124_v24 = vand.u32 4294901760, %v123_v23  ;;  %v461_v17 = vsel %vm102_vm6, %v460_v15, %v459_v16  ;;  %v790_v16 = vld [vmem:[#allocation2 + $0xa] sm:$0x1] }
  0x1f   :  { %v478_v18 = vand.u32 4294901760, %v461_v17 }
  0x20   :  { %v125_v25 = vsub.f32 %v123_v23, %v124_v24  ;;  %201 = vmatmul.f32.vlgmr.msra.gmra.mxu3 %v124_v24  ;;  %223 = vmatpush.xpose.msrb.mxu0 %v124_v24 }
  0x21   :  { %177 = vmatmul.f32.vlgmr.msra.gmra.mxu2 %v123_v23  ;;  %324 = vmatpush.msrb.mxu3 %v3140_v54  ;;  %v481_v20 = vsub.f32 %v461_v17, %v478_v18 }
  0x22   :  { %v126_v26 = vand.u32 4294901760, %v125_v25  ;;  %294 = vmatpush.msrb.mxu2 %v3126_v48 }
  0x23   :  { %418 = vmatpush.msra.mxu3 %v3126_v48 }
  0x24   :  { %151 = vmatpush.xpose.msra.mxu1 %v126_v26  ;;  %127 = vmatmul.f32.vlgmr.msra.gmra.mxu0 %v126_v26 }
  0x25   :  { %347 = vmatpush.msra.mxu0 %v3129_v50  ;;  %396 = vmatpush.msra.mxu2 %v3134_v51 }
  0x27   :  { %153 = vmatmul.f32.vlgmr.msra.gmra.mxu1 %v120_v22 }
  0x28   :  { %245 = vmatpush.xpose.msrb.mxu1 %v120_v22 }
  0x2c   :  { %225 = vmatmul.f32.vlgmr.msrb.gmra.mxu0 %v120_v22  ;;  %370 = vmatpush.msra.mxu1 %v3126_v48 }
  0x2d   :  { %479 = vmatpush.xpose.msrb.mxu0 %v478_v18 }
  0x2f   :  { %247 = vmatmul.f32.vlgmr.msrb.gmra.mxu1 %v120_v22  ;;  %v482_v22 = vand.u32 4294901760, %v481_v20 }
  0x31   :  { %v483_v24 = vsub.f32 %v481_v20, %v482_v22 }
  0x33   :  { %v484_v26 = vand.u32 4294901760, %v483_v24  ;;  %v793_v24 = vld [vmem:[#allocation2 + $0x22] sm:$0x1] }
  0x35   :  { %509 = vmatpush.xpose.msrb.mxu1 %v484_v26 }
  0xa1   :  { %v128_v27 = vpop.f32.mrf.mxu0 }
  0xa3   :  { %v202_v34 = vpop.f32.mrf.mxu3 }
  0xa4   :  { %v154_v29 = vpop.f32.mrf.mxu1  ;;  %v178_v30 = vpop.f32.mrf.mxu2 }
  0xa5   :  { %v155_v31 = vadd.f32 %v154_v29, %v128_v27 }
  0xa7   :  { %v179_v35 = vadd.f32 %v178_v30, %v155_v31 }
  0xa9   :  { %v203_v36 = vadd.f32 %v202_v34, %v179_v35  ;;  %v226_v37 = vpop.f32.mrf.mxu0 }
  0xab   :  { %v227_v38 = vadd.f32 %v226_v37, %v203_v36 }
  0xac   :  { %v248_v41 = vpop.f32.mrf.mxu1 }
  0xad   :  { %v3121_v42 = vadd.f32 %v248_v41, %v227_v38 }
  0xaf   :  { %v251_v43 = vmul.f32 %v3119_v40, %v3121_v42 }
  0xb1   :  { %v253_v44 = vsel %vm252_vm8, %v251_v43, 0.0 }
  0xb2   :  { %254 = vadd.xlane.f32.xlu0 %v253_v44  ;;  %v256_v45 = vrot.slane %v253_v44, 4 }
  0xb4   :  { %v257_v46 = vadd.f32 %v256_v45, %v253_v44 }
  0xb6   :  { %v258_v49 = vrot.slane %v257_v46, 2 }
  0xb8   :  { %v259_v52 = vadd.f32 %v258_v49, %v257_v46 }
  0xba   :  { %v260_v55 = vrot.slane %v259_v52, 1 }
  0xbc   :  { %v261_v56 = vadd.f32 %v260_v55, %v259_v52  ;;  %v3159_v52 = vld [vmem:[#allocation7] sm:$0xff] }
 0x125   :  { %v255_v58 = vpop.xlane.xlu0 %254 }
 0x126   :  { %v262_v61 = vmul.f32 %v261_v56, %v255_v58 }
 0x128   :  { %v263_v4 = vmax.f32 %v262_v61, 1e-18 }
 0x12a   :  { %2957 = vrsqrt.f32 %v263_v4  ;;  %vm270_vm10 = vweird.f32 %v263_v4 }
 0x130   :  { %v2958_v19 = vpop.eup %2957 }
 0x131   :  { %v265_v21 = vmul.f32 %v2958_v19, %v263_v4  ;;  %vm271_vm9 = vweird.f32 %v2958_v19 }
 0x132   :  { %vm272_vm11 = vmor %vm270_vm10, %vm271_vm9 }
 0x133   :  { %v266_v23 = vmul.f32 %v2958_v19, %v265_v21  ;;  %v789_v21 = vld [vmem:[#allocation2 + $0x2] sm:$0x1] }
 0x135   :  { %v267_v25 = vmul.f32 0.5, %v266_v23 }
 0x137   :  { %v268_v27 = vsub.f32 1.5, %v267_v25 }
 0x139   :  { %v269_v28 = vmul.f32 %v2958_v19, %v268_v27 }
 0x13b   :  { %v273_v29 = vsel %vm272_vm11, %v2958_v19, %v269_v28  ;;  %v805_v19 = vrot.slane %v790_v16, 7  ;;  %v794_v28 = vld [vmem:[#allocation2 + $0x2a] sm:$0x1] }
 0x13c   :  { %v274_v30 = vmul.f32 %v273_v29, %v3121_v42 }
 0x13d   :  { %v806_v25 = vsel %vm84_vm0, %v805_v19, %v789_v21 }
 0x13e   :  { %v276_v31 = vsel %vm252_vm8, %v274_v30, 0  ;;  %v811_v30 = vrot.slane %v793_v24, 4 }
 0x13f   :  { %v295_v32 = vand.u32 4294901760, %v276_v31 }
 0x141   :  { %326 = vmatmul.f32.vlgmr.msrb.gmra.mxu3 %v295_v32  ;;  %v296_v33 = vsub.f32 %v276_v31, %v295_v32  ;;  %v795_v31 = vld [vmem:[#allocation2 + $0x32] sm:$0x1] }
 0x142   :  { %555 = vmatpush.xpose.msrb.mxu3 %v478_v18 }
 0x143   :  { %350 = vmatmul.f32.vlgmr.msra.gmra.mxu0 %v296_v33  ;;  %v297_v34 = vand.u32 4294901760, %v296_v33 }
 0x144   :  { %581 = vmatpush.xpose.msra.mxu0 %v482_v22 }
 0x145   :  { %374 = vmatmul.f32.vlgmr.msra.gmra.mxu1 %v297_v34  ;;  %v298_v35 = vsub.f32 %v296_v33, %v297_v34  ;;  %v813_v33 = vrot.slane %v794_v28, 3  ;;  %v796_v34 = vld [vmem:[#allocation2 + $0x3a] sm:$0x1] }
 0x146   :  { %603 = vmatpush.xpose.msra.mxu1 %v478_v18 }
 0x147   :  { %v299_v36 = vand.u32 4294901760, %v298_v35 }
 0x149   :  { %300 = vmatmul.f32.vlgmr.msrb.gmra.mxu2 %v299_v36  ;;  %420 = vmatmul.f32.vlgmr.msra.gmra.mxu3 %v295_v32  ;;  %v815_v36 = vrot.slane %v795_v31, 2 }
 0x14a   :  { %532 = vmatpush.xpose.msrb.mxu2 %v481_v20  ;;  %681 = vmatpush.msra.mxu3 %v3140_v54 }
 0x14b   :  { %485 = vmatmul.f32.vlgmr.msrb.gmra.mxu0 %v484_v26 }
 0x14c   :  { %704 = vmatpush.msrb.mxu0 %v3129_v50 }
 0x14d   :  { %511 = vmatmul.f32.vlgmr.msrb.gmra.mxu1 %v478_v18 }
 0x14e   :  { %727 = vmatpush.msrb.mxu1 %v3126_v48 }
 0x151   :  { %398 = vmatmul.f32.vlgmr.msra.gmra.mxu2 %v295_v32  ;;  %559 = vmatmul.f32.vlgmr.msrb.gmra.mxu3 %v482_v22  ;;  %v792_v22 = vld [vmem:[#allocation2 + $0x1a] sm:$0x1] }
 0x152   :  { %651 = vmatpush.msra.mxu2 %v3126_v48  ;;  %775 = vmatpush.msrb.mxu3 %v3126_v48  ;;  %v809_v26 = vrot.slane %v792_v22, 5 }
 0x153   :  { %583 = vmatmul.f32.vlgmr.msra.gmra.mxu0 %v478_v18 }
 0x155   :  { %605 = vmatmul.f32.vlgmr.msra.gmra.mxu1 %v478_v18  ;;  %v791_v18 = vld [vmem:[#allocation2 + $0x12] sm:$0x1] }
 0x156   :  { %v807_v23 = vrot.slane %v791_v18, 6 }
 0x158   :  { %v808_v29 = vsel %vm87_vm1, %v807_v23, %v806_v25 }
 0x159   :  { %535 = vmatmul.f32.vlgmr.msrb.gmra.mxu2 %v481_v20  ;;  %v810_v32 = vsel %vm90_vm2, %v809_v26, %v808_v29 }
 0x15a   :  { %753 = vmatpush.msrb.mxu2 %v3134_v51  ;;  %v812_v35 = vsel %vm93_vm3, %v811_v30, %v810_v32 }
 0x1c0   :  { %v351_v38 = vpop.f32.mrf.mxu0 }
 0x1c2   :  { %v375_v43 = vpop.f32.mrf.mxu1 }
 0x1c4   :  { %v327_v37 = vpop.f32.mrf.mxu3 }
 0x1c8   :  { %v486_v45 = vpop.f32.mrf.mxu0 }
 0x1ca   :  { %v512_v55 = vpop.f32.mrf.mxu1 }
 0x1cb   :  { %v513_v58 = vadd.f32 %v512_v55, %v486_v45 }
 0x1cc   :  { %v301_v39 = vpop.f32.mrf.mxu2  ;;  %v421_v46 = vpop.f32.mrf.mxu3 }
 0x1cd   :  { %v328_v41 = vadd.f32 %v327_v37, %v301_v39  ;;  %v814_v37 = vsel %vm96_vm4, %v813_v33, %v812_v35 }
 0x1ce   :  { %v816_v39 = vsel %vm99_vm5, %v815_v36, %v814_v37 }
 0x1cf   :  { %v352_v42 = vadd.f32 %v351_v38, %v328_v41  ;;  %v817_v38 = vrot.slane %v796_v34, 1 }
 0x1d0   :  { %v584_v63 = vpop.f32.mrf.mxu0 }
 0x1d1   :  { %v376_v44 = vadd.f32 %v375_v43, %v352_v42  ;;  %v818_v41 = vsel %vm102_vm6, %v817_v38, %v816_v39  ;;  %v1147_v39 = vld [vmem:[#allocation2 + $0xb] sm:$0x1] }
 0x1d2   :  { %v606_v2 = vpop.f32.mrf.mxu1  ;;  %v835_v42 = vand.u32 4294901760, %v818_v41 }
 0x1d4   :  { %v399_v47 = vpop.f32.mrf.mxu2  ;;  %v560_v60 = vpop.f32.mrf.mxu3  ;;  %836 = vmatpush.xpose.msra.mxu0 %v835_v42 }
 0x1d5   :  { %v400_v49 = vadd.f32 %v399_v47, %v376_v44  ;;  %v838_v44 = vsub.f32 %v818_v41, %v835_v42 }
 0x1d7   :  { %v422_v53 = vadd.f32 %v421_v46, %v400_v49  ;;  %v839_v46 = vand.u32 4294901760, %v838_v44 }
 0x1d9   :  { %v424_v56 = vmul.f32 %v422_v53, %v3159_v52  ;;  %v840_v49 = vsub.f32 %v838_v44, %v839_v46 }
 0x1db   :  { %v425_v57 = vrot.slane %v424_v56, 4  ;;  %v841_v55 = vand.u32 4294901760, %v840_v49  ;;  %v1150_v49 = vld [vmem:[#allocation2 + $0x23] sm:$0x1] }
 0x1dc   :  { %v536_v59 = vpop.f32.mrf.mxu2 }
 0x1dd   :  { %v426_v61 = vadd.f32 %v425_v57, %v424_v56  ;;  %v537_v62 = vadd.f32 %v536_v59, %v513_v58  ;;  %866 = vmatpush.xpose.msra.mxu1 %v841_v55 }
 0x1df   :  { %v427_v0 = vrot.slane %v426_v61, 2  ;;  %v561_v1 = vadd.f32 %v560_v60, %v537_v62 }
 0x1e1   :  { %v428_v3 = vadd.f32 %v427_v0, %v426_v61  ;;  %v585_v4 = vadd.f32 %v584_v63, %v561_v1 }
 0x1e3   :  { %v429_v5 = vrot.slane %v428_v3, 1  ;;  %v607_v6 = vadd.f32 %v606_v2, %v585_v4 }
 0x1e5   :  { %v430_v7 = vadd.f32 %v429_v5, %v428_v3  ;;  %v609_v8 = vmul.f32 %v3119_v40, %v607_v6 }
 0x1e7   :  { %431 = vst [vmem:[#allocation8] sm:$0x1] %v430_v7  ;;  %v610_v9 = vsel %vm252_vm8, %v609_v8, 0.0 }
 0x1e8   :  { %611 = vadd.xlane.f32.xlu0 %v610_v9  ;;  %v613_v10 = vrot.slane %v610_v9, 4 }
 0x1ea   :  { %v614_v11 = vadd.f32 %v613_v10, %v610_v9 }
 0x1ec   :  { %v615_v12 = vrot.slane %v614_v11, 2 }
 0x1ee   :  { %v616_v13 = vadd.f32 %v615_v12, %v614_v11 }
 0x1f0   :  { %v617_v14 = vrot.slane %v616_v13, 1 }
 0x1f2   :  { %v618_v15 = vadd.f32 %v617_v14, %v616_v13 }
 0x25b   :  { %v612_v17 = vpop.xlane.xlu0 %611 }
 0x25c   :  { %v619_v20 = vmul.f32 %v618_v15, %v612_v17 }
 0x25e   :  { %v620_v27 = vmax.f32 %v619_v20, 1e-18 }
 0x260   :  { %2959 = vrsqrt.f32 %v620_v27  ;;  %vm627_vm13 = vweird.f32 %v620_v27 }
 0x266   :  { %v2960_v43 = vpop.eup %2959 }
 0x267   :  { %v622_v45 = vmul.f32 %v2960_v43, %v620_v27  ;;  %vm628_vm12 = vweird.f32 %v2960_v43 }
 0x268   :  { %vm629_vm14 = vmor %vm627_vm13, %vm628_vm12 }
 0x269   :  { %v623_v47 = vmul.f32 %v2960_v43, %v622_v45  ;;  %v1146_v45 = vld [vmem:[#allocation2 + $0x3] sm:$0x1] }
 0x26b   :  { %v624_v53 = vmul.f32 0.5, %v623_v47 }
 0x26d   :  { %v625_v56 = vsub.f32 1.5, %v624_v53 }
 0x26f   :  { %v626_v57 = vmul.f32 %v2960_v43, %v625_v56 }
 0x271   :  { %v630_v58 = vsel %vm629_vm14, %v2960_v43, %v626_v57  ;;  %v1162_v43 = vrot.slane %v1147_v39, 7  ;;  %v1151_v57 = vld [vmem:[#allocation2 + $0x2b] sm:$0x1] }
 0x272   :  { %v631_v59 = vmul.f32 %v630_v58, %v607_v6 }
 0x273   :  { %v1163_v53 = vsel %vm84_vm0, %v1162_v43, %v1146_v45 }
 0x274   :  { %v633_v60 = vsel %vm252_vm8, %v631_v59, 0  ;;  %v1168_v59 = vrot.slane %v1150_v49, 4 }
 0x275   :  { %v652_v61 = vand.u32 4294901760, %v633_v60 }
 0x277   :  { %683 = vmatmul.f32.vlgmr.msra.gmra.mxu3 %v652_v61  ;;  %v653_v62 = vsub.f32 %v633_v60, %v652_v61  ;;  %v1152_v60 = vld [vmem:[#allocation2 + $0x33] sm:$0x1] }
 0x278   :  { %912 = vmatpush.xpose.msra.mxu3 %v835_v42 }
 0x279   :  { %707 = vmatmul.f32.vlgmr.msrb.gmra.mxu0 %v653_v62  ;;  %v654_v63 = vand.u32 4294901760, %v653_v62 }
 0x27a   :  { %938 = vmatpush.xpose.msrb.mxu0 %v839_v46 }
 0x27b   :  { %731 = vmatmul.f32.vlgmr.msrb.gmra.mxu1 %v654_v63  ;;  %v655_v0 = vsub.f32 %v653_v62, %v654_v63  ;;  %v1170_v62 = vrot.slane %v1151_v57, 3  ;;  %v1153_v63 = vld [vmem:[#allocation2 + $0x3b] sm:$0x1] }
 0x27c   :  { %960 = vmatpush.xpose.msrb.mxu1 %v835_v42 }
 0x27d   :  { %v656_v1 = vand.u32 4294901760, %v655_v0 }
 0x27f   :  { %657 = vmatmul.f32.vlgmr.msra.gmra.mxu2 %v656_v1  ;;  %777 = vmatmul.f32.vlgmr.msrb.gmra.mxu3 %v652_v61  ;;  %v1172_v1 = vrot.slane %v1152_v60, 2 }
 0x280   :  { %889 = vmatpush.xpose.msra.mxu2 %v838_v44  ;;  %1038 = vmatpush.msrb.mxu3 %v3140_v54 }
 0x281   :  { %842 = vmatmul.f32.vlgmr.msra.gmra.mxu0 %v841_v55 }
 0x282   :  { %1061 = vmatpush.msra.mxu0 %v3129_v50 }
 0x283   :  { %868 = vmatmul.f32.vlgmr.msra.gmra.mxu1 %v835_v42 }
 0x284   :  { %1084 = vmatpush.msra.mxu1 %v3126_v48 }
 0x287   :  { %755 = vmatmul.f32.vlgmr.msrb.gmra.mxu2 %v652_v61  ;;  %916 = vmatmul.f32.vlgmr.msra.gmra.mxu3 %v839_v46  ;;  %v1149_v46 = vld [vmem:[#allocation2 + $0x1b] sm:$0x1] }
 0x288   :  { %1008 = vmatpush.msrb.mxu2 %v3126_v48  ;;  %1132 = vmatpush.msra.mxu3 %v3126_v48  ;;  %v1166_v55 = vrot.slane %v1149_v46, 5 }
 0x289   :  { %940 = vmatmul.f32.vlgmr.msrb.gmra.mxu0 %v835_v42 }
 0x28b   :  { %962 = vmatmul.f32.vlgmr.msrb.gmra.mxu1 %v835_v42  ;;  %v1148_v42 = vld [vmem:[#allocation2 + $0x13] sm:$0x1] }
 0x28c   :  { %v1164_v47 = vrot.slane %v1148_v42, 6 }
 0x28e   :  { %v1165_v58 = vsel %vm87_vm1, %v1164_v47, %v1163_v53 }
 0x28f   :  { %892 = vmatmul.f32.vlgmr.msra.gmra.mxu2 %v838_v44  ;;  %v1167_v61 = vsel %vm90_vm2, %v1166_v55, %v1165_v58 }
 0x290   :  { %1110 = vmatpush.msra.mxu2 %v3134_v51  ;;  %v1169_v0 = vsel %vm93_vm3, %v1168_v59, %v1167_v61 }
 0x2f6   :  { %v708_v3 = vpop.f32.mrf.mxu0 }
 0x2f8   :  { %v732_v7 = vpop.f32.mrf.mxu1 }
 0x2fa   :  { %v684_v2 = vpop.f32.mrf.mxu3 }
 0x2fe   :  { %v843_v9 = vpop.f32.mrf.mxu0 }
 0x300   :  { %v869_v14 = vpop.f32.mrf.mxu1 }
 0x301   :  { %v870_v17 = vadd.f32 %v869_v14, %v843_v9 }
 0x302   :  { %v658_v4 = vpop.f32.mrf.mxu2  ;;  %v778_v10 = vpop.f32.mrf.mxu3 }
 0x303   :  { %v685_v5 = vadd.f32 %v684_v2, %v658_v4  ;;  %v1171_v2 = vsel %vm96_vm4, %v1170_v62, %v1169_v0 }
 0x304   :  { %v1173_v4 = vsel %vm99_vm5, %v1172_v1, %v1171_v2 }
 0x305   :  { %v709_v6 = vadd.f32 %v708_v3, %v685_v5  ;;  %v1174_v3 = vrot.slane %v1153_v63, 1 }
 0x306   :  { %v941_v22 = vpop.f32.mrf.mxu0 }
 0x307   :  { %v733_v8 = vadd.f32 %v732_v7, %v709_v6  ;;  %v1175_v5 = vsel %vm102_vm6, %v1174_v3, %v1173_v4  ;;  %v1504_v4 = vld [vmem:[#allocation2 + $0xc] sm:$0x1] }
 0x308   :  { %v963_v25 = vpop.f32.mrf.mxu1  ;;  %v1192_v6 = vand.u32 4294901760, %v1175_v5 }
 0x30a   :  { %v756_v11 = vpop.f32.mrf.mxu2  ;;  %v917_v19 = vpop.f32.mrf.mxu3  ;;  %1193 = vmatpush.xpose.msrb.mxu0 %v1192_v6 }
 0x30b   :  { %v757_v12 = vadd.f32 %v756_v11, %v733_v8  ;;  %v1195_v8 = vsub.f32 %v1175_v5, %v1192_v6 }
 0x30d   :  { %v779_v13 = vadd.f32 %v778_v10, %v757_v12  ;;  %v1196_v10 = vand.u32 4294901760, %v1195_v8 }
 0x30f   :  { %v781_v15 = vmul.f32 %v779_v13, %v3159_v52  ;;  %v1197_v12 = vsub.f32 %v1195_v8, %v1196_v10 }
 0x311   :  { %v782_v16 = vrot.slane %v781_v15, 4  ;;  %v1198_v14 = vand.u32 4294901760, %v1197_v12  ;;  %v1507_v12 = vld [vmem:[#allocation2 + $0x24] sm:$0x1] }
 0x312   :  { %v893_v18 = vpop.f32.mrf.mxu2 }
 0x313   :  { %v783_v20 = vadd.f32 %v782_v16, %v781_v15  ;;  %v894_v21 = vadd.f32 %v893_v18, %v870_v17  ;;  %1223 = vmatpush.xpose.msrb.mxu1 %v1198_v14 }
 0x315   :  { %v784_v23 = vrot.slane %v783_v20, 2  ;;  %v918_v24 = vadd.f32 %v917_v19, %v894_v21 }
 0x317   :  { %v785_v26 = vadd.f32 %v784_v23, %v783_v20  ;;  %v942_v27 = vadd.f32 %v941_v22, %v918_v24 }
 0x319   :  { %v786_v28 = vrot.slane %v785_v26, 1  ;;  %v964_v29 = vadd.f32 %v963_v25, %v942_v27 }
 0x31b   :  { %v787_v30 = vadd.f32 %v786_v28, %v785_v26  ;;  %v966_v31 = vmul.f32 %v3119_v40, %v964_v29 }
 0x31d   :  { %788 = vst [vmem:[#allocation8 + $0x1] sm:$0x1] %v787_v30  ;;  %v967_v32 = vsel %vm252_vm8, %v966_v31, 0.0 }
 0x31e   :  { %968 = vadd.xlane.f32.xlu1 %v967_v32  ;;  %v970_v33 = vrot.slane %v967_v32, 4 }
 0x320   :  { %v971_v34 = vadd.f32 %v970_v33, %v967_v32 }
 0x322   :  { %v972_v35 = vrot.slane %v971_v34, 2 }
 0x324   :  { %v973_v36 = vadd.f32 %v972_v35, %v971_v34 }
 0x326   :  { %v974_v37 = vrot.slane %v973_v36, 1 }
 0x328   :  { %v975_v38 = vadd.f32 %v974_v37, %v973_v36 }
 0x391   :  { %v969_v41 = vpop.xlane.xlu1 %968 }
 0x392   :  { %v976_v44 = vmul.f32 %v975_v38, %v969_v41 }
 0x394   :  { %v977_v56 = vmax.f32 %v976_v44, 1e-18 }
 0x396   :  { %2961 = vrsqrt.f32 %v977_v56  ;;  %vm984_vm7 = vweird.f32 %v977_v56 }
 0x39c   :  { %v2962_v7 = vpop.eup %2961 }
 0x39d   :  { %v979_v9 = vmul.f32 %v2962_v7, %v977_v56  ;;  %vm985_vm15 = vweird.f32 %v2962_v7 }
 0x39e   :  { %vm986_vm9 = vmor %vm984_vm7, %vm985_vm15 }
 0x39f   :  { %v980_v11 = vmul.f32 %v2962_v7, %v979_v9  ;;  %v1503_v9 = vld [vmem:[#allocation2 + $0x4] sm:$0x1] }
 0x3a1   :  { %v981_v13 = vmul.f32 0.5, %v980_v11 }
 0x3a3   :  { %v982_v15 = vsub.f32 1.5, %v981_v13 }
 0x3a5   :  { %v983_v16 = vmul.f32 %v2962_v7, %v982_v15 }
 0x3a7   :  { %v987_v17 = vsel %vm986_vm9, %v2962_v7, %v983_v16  ;;  %v1519_v7 = vrot.slane %v1504_v4, 7  ;;  %v1508_v16 = vld [vmem:[#allocation2 + $0x2c] sm:$0x1] }
 0x3a8   :  { %v988_v18 = vmul.f32 %v987_v17, %v964_v29 }
 0x3a9   :  { %v1520_v13 = vsel %vm84_vm0, %v1519_v7, %v1503_v9 }
 0x3aa   :  { %v990_v19 = vsel %vm252_vm8, %v988_v18, 0  ;;  %v1525_v18 = vrot.slane %v1507_v12, 4 }
 0x3ab   :  { %v1009_v20 = vand.u32 4294901760, %v990_v19 }
 0x3ad   :  { %1040 = vmatmul.f32.vlgmr.msrb.gmra.mxu3 %v1009_v20  ;;  %v1010_v21 = vsub.f32 %v990_v19, %v1009_v20  ;;  %v1509_v19 = vld [vmem:[#allocation2 + $0x34] sm:$0x1] }
 0x3ae   :  { %1269 = vmatpush.xpose.msrb.mxu3 %v1192_v6 }
 0x3af   :  { %1064 = vmatmul.f32.vlgmr.msra.gmra.mxu0 %v1010_v21  ;;  %v1011_v22 = vand.u32 4294901760, %v1010_v21 }
 0x3b0   :  { %1295 = vmatpush.xpose.msra.mxu0 %v1196_v10 }
 0x3b1   :  { %1088 = vmatmul.f32.vlgmr.msra.gmra.mxu1 %v1011_v22  ;;  %v1012_v23 = vsub.f32 %v1010_v21, %v1011_v22  ;;  %v1527_v21 = vrot.slane %v1508_v16, 3  ;;  %v1510_v22 = vld [vmem:[#allocation2 + $0x3c] sm:$0x1] }
 0x3b2   :  { %1317 = vmatpush.xpose.msra.mxu1 %v1192_v6 }
 0x3b3   :  { %v1013_v24 = vand.u32 4294901760, %v1012_v23 }
 0x3b5   :  { %1014 = vmatmul.f32.vlgmr.msrb.gmra.mxu2 %v1013_v24  ;;  %1134 = vmatmul.f32.vlgmr.msra.gmra.mxu3 %v1009_v20  ;;  %v1529_v24 = vrot.slane %v1509_v19, 2 }
 0x3b6   :  { %1246 = vmatpush.xpose.msrb.mxu2 %v1195_v8  ;;  %1395 = vmatpush.msra.mxu3 %v3140_v54 }
 0x3b7   :  { %1199 = vmatmul.f32.vlgmr.msrb.gmra.mxu0 %v1198_v14 }
 0x3b8   :  { %1418 = vmatpush.msrb.mxu0 %v3129_v50 }
 0x3b9   :  { %1225 = vmatmul.f32.vlgmr.msrb.gmra.mxu1 %v1192_v6 }
 0x3ba   :  { %1441 = vmatpush.msrb.mxu1 %v3126_v48 }
 0x3bd   :  { %1112 = vmatmul.f32.vlgmr.msra.gmra.mxu2 %v1009_v20  ;;  %1273 = vmatmul.f32.vlgmr.msrb.gmra.mxu3 %v1196_v10  ;;  %v1506_v10 = vld [vmem:[#allocation2 + $0x1c] sm:$0x1] }
 0x3be   :  { %1365 = vmatpush.msra.mxu2 %v3126_v48  ;;  %1489 = vmatpush.msrb.mxu3 %v3126_v48  ;;  %v1523_v14 = vrot.slane %v1506_v10, 5 }
 0x3bf   :  { %1297 = vmatmul.f32.vlgmr.msra.gmra.mxu0 %v1192_v6 }
 0x3c1   :  { %1319 = vmatmul.f32.vlgmr.msra.gmra.mxu1 %v1192_v6  ;;  %v1505_v6 = vld [vmem:[#allocation2 + $0x14] sm:$0x1] }
 0x3c2   :  { %v1521_v11 = vrot.slane %v1505_v6, 6 }
 0x3c4   :  { %v1522_v17 = vsel %vm87_vm1, %v1521_v11, %v1520_v13 }
 0x3c5   :  { %1249 = vmatmul.f32.vlgmr.msrb.gmra.mxu2 %v1195_v8  ;;  %v1524_v20 = vsel %vm90_vm2, %v1523_v14, %v1522_v17 }
 0x3c6   :  { %1467 = vmatpush.msrb.mxu2 %v3134_v51  ;;  %v1526_v23 = vsel %vm93_vm3, %v1525_v18, %v1524_v20 }
 0x42c   :  { %v1065_v26 = vpop.f32.mrf.mxu0 }
 0x42e   :  { %v1089_v30 = vpop.f32.mrf.mxu1 }
 0x430   :  { %v1041_v25 = vpop.f32.mrf.mxu3 }
 0x434   :  { %v1200_v32 = vpop.f32.mrf.mxu0 }
 0x436   :  { %v1226_v37 = vpop.f32.mrf.mxu1 }
 0x437   :  { %v1227_v41 = vadd.f32 %v1226_v37, %v1200_v32 }
 0x438   :  { %v1015_v27 = vpop.f32.mrf.mxu2  ;;  %v1135_v33 = vpop.f32.mrf.mxu3 }
 0x439   :  { %v1042_v28 = vadd.f32 %v1041_v25, %v1015_v27  ;;  %v1528_v25 = vsel %vm96_vm4, %v1527_v21, %v1526_v23 }
 0x43a   :  { %v1530_v27 = vsel %vm99_vm5, %v1529_v24, %v1528_v25 }
 0x43b   :  { %v1066_v29 = vadd.f32 %v1065_v26, %v1042_v28  ;;  %v1531_v26 = vrot.slane %v1510_v22, 1 }
 0x43c   :  { %v1298_v46 = vpop.f32.mrf.mxu0 }
 0x43d   :  { %v1090_v31 = vadd.f32 %v1089_v30, %v1066_v29  ;;  %v1532_v28 = vsel %vm102_vm6, %v1531_v26, %v1530_v27  ;;  %v1861_v27 = vld [vmem:[#allocation2 + $0xd] sm:$0x1] }
 0x43e   :  { %v1320_v53 = vpop.f32.mrf.mxu1  ;;  %v1549_v29 = vand.u32 4294901760, %v1532_v28 }
 0x440   :  { %v1113_v34 = vpop.f32.mrf.mxu2  ;;  %v1274_v43 = vpop.f32.mrf.mxu3  ;;  %1550 = vmatpush.xpose.msra.mxu0 %v1549_v29 }
 0x441   :  { %v1114_v35 = vadd.f32 %v1113_v34, %v1090_v31  ;;  %v1552_v31 = vsub.f32 %v1532_v28, %v1549_v29 }
 0x443   :  { %v1136_v36 = vadd.f32 %v1135_v33, %v1114_v35  ;;  %v1553_v33 = vand.u32 4294901760, %v1552_v31 }
 0x445   :  { %v1138_v38 = vmul.f32 %v1136_v36, %v3159_v52  ;;  %v1554_v35 = vsub.f32 %v1552_v31, %v1553_v33 }
 0x447   :  { %v1139_v39 = vrot.slane %v1138_v38, 4  ;;  %v1555_v37 = vand.u32 4294901760, %v1554_v35  ;;  %v1864_v35 = vld [vmem:[#allocation2 + $0x25] sm:$0x1] }
 0x448   :  { %v1250_v42 = vpop.f32.mrf.mxu2 }
 0x449   :  { %v1140_v44 = vadd.f32 %v1139_v39, %v1138_v38  ;;  %v1251_v45 = vadd.f32 %v1250_v42, %v1227_v41  ;;  %1580 = vmatpush.xpose.msra.mxu1 %v1555_v37 }
 0x44b   :  { %v1141_v47 = vrot.slane %v1140_v44, 2  ;;  %v1275_v49 = vadd.f32 %v1274_v43, %v1251_v45 }
 0x44d   :  { %v1142_v55 = vadd.f32 %v1141_v47, %v1140_v44  ;;  %v1299_v56 = vadd.f32 %v1298_v46, %v1275_v49 }
 0x44f   :  { %v1143_v57 = vrot.slane %v1142_v55, 1  ;;  %v1321_v58 = vadd.f32 %v1320_v53, %v1299_v56 }
 0x451   :  { %v1144_v59 = vadd.f32 %v1143_v57, %v1142_v55  ;;  %v1323_v60 = vmul.f32 %v3119_v40, %v1321_v58 }
 0x453   :  { %1145 = vst [vmem:[#allocation8 + $0x2] sm:$0x1] %v1144_v59  ;;  %v1324_v61 = vsel %vm252_vm8, %v1323_v60, 0.0 }
 0x454   :  { %1325 = vadd.xlane.f32.xlu1 %v1324_v61  ;;  %v1327_v62 = vrot.slane %v1324_v61, 4 }
 0x456   :  { %v1328_v63 = vadd.f32 %v1327_v62, %v1324_v61 }
 0x458   :  { %v1329_v0 = vrot.slane %v1328_v63, 2 }
 0x45a   :  { %v1330_v1 = vadd.f32 %v1329_v0, %v1328_v63 }
 0x45c   :  { %v1331_v2 = vrot.slane %v1330_v1, 1 }
 0x45e   :  { %v1332_v3 = vadd.f32 %v1331_v2, %v1330_v1 }
 0x4c7   :  { %v1326_v5 = vpop.xlane.xlu1 %1325 }
 0x4c8   :  { %v1333_v8 = vmul.f32 %v1332_v3, %v1326_v5 }
 0x4ca   :  { %v1334_v15 = vmax.f32 %v1333_v8, 1e-18 }
 0x4cc   :  { %2963 = vrsqrt.f32 %v1334_v15  ;;  %vm1341_vm11 = vweird.f32 %v1334_v15 }
 0x4d2   :  { %v2964_v30 = vpop.eup %2963 }
 0x4d3   :  { %v1336_v32 = vmul.f32 %v2964_v30, %v1334_v15  ;;  %vm1342_vm10 = vweird.f32 %v2964_v30 }
 0x4d4   :  { %vm1343_vm12 = vmor %vm1341_vm11, %vm1342_vm10 }
 0x4d5   :  { %v1337_v34 = vmul.f32 %v2964_v30, %v1336_v32  ;;  %v1860_v32 = vld [vmem:[#allocation2 + $0x5] sm:$0x1] }
 0x4d7   :  { %v1338_v36 = vmul.f32 0.5, %v1337_v34 }
 0x4d9   :  { %v1339_v38 = vsub.f32 1.5, %v1338_v36 }
 0x4db   :  { %v1340_v39 = vmul.f32 %v2964_v30, %v1339_v38 }
 0x4dd   :  { %v1344_v41 = vsel %vm1343_vm12, %v2964_v30, %v1340_v39  ;;  %v1876_v30 = vrot.slane %v1861_v27, 7  ;;  %v1865_v39 = vld [vmem:[#allocation2 + $0x2d] sm:$0x1] }
 0x4de   :  { %v1345_v42 = vmul.f32 %v1344_v41, %v1321_v58 }
 0x4df   :  { %v1877_v36 = vsel %vm84_vm0, %v1876_v30, %v1860_v32 }
 0x4e0   :  { %v1347_v43 = vsel %vm252_vm8, %v1345_v42, 0  ;;  %v1882_v42 = vrot.slane %v1864_v35, 4 }
 0x4e1   :  { %v1366_v44 = vand.u32 4294901760, %v1347_v43 }
 0x4e3   :  { %1397 = vmatmul.f32.vlgmr.msra.gmra.mxu3 %v1366_v44  ;;  %v1367_v45 = vsub.f32 %v1347_v43, %v1366_v44  ;;  %v1866_v43 = vld [vmem:[#allocation2 + $0x35] sm:$0x1] }
 0x4e4   :  { %1626 = vmatpush.xpose.msra.mxu3 %v1549_v29 }
 0x4e5   :  { %1421 = vmatmul.f32.vlgmr.msrb.gmra.mxu0 %v1367_v45  ;;  %v1368_v46 = vand.u32 4294901760, %v1367_v45 }
 0x4e6   :  { %1652 = vmatpush.xpose.msrb.mxu0 %v1553_v33 }
 0x4e7   :  { %1445 = vmatmul.f32.vlgmr.msrb.gmra.mxu1 %v1368_v46  ;;  %v1369_v47 = vsub.f32 %v1367_v45, %v1368_v46  ;;  %v1884_v45 = vrot.slane %v1865_v39, 3  ;;  %v1867_v46 = vld [vmem:[#allocation2 + $0x3d] sm:$0x1] }
 0x4e8   :  { %1674 = vmatpush.xpose.msrb.mxu1 %v1549_v29 }
 0x4e9   :  { %v1370_v49 = vand.u32 4294901760, %v1369_v47 }
 0x4eb   :  { %1371 = vmatmul.f32.vlgmr.msra.gmra.mxu2 %v1370_v49  ;;  %1491 = vmatmul.f32.vlgmr.msrb.gmra.mxu3 %v1366_v44  ;;  %v1886_v49 = vrot.slane %v1866_v43, 2 }
 0x4ec   :  { %1603 = vmatpush.xpose.msra.mxu2 %v1552_v31  ;;  %1752 = vmatpush.msrb.mxu3 %v3140_v54 }
 0x4ed   :  { %1556 = vmatmul.f32.vlgmr.msra.gmra.mxu0 %v1555_v37 }
 0x4ee   :  { %1775 = vmatpush.msra.mxu0 %v3129_v50 }
 0x4ef   :  { %1582 = vmatmul.f32.vlgmr.msra.gmra.mxu1 %v1549_v29 }
 0x4f0   :  { %1798 = vmatpush.msra.mxu1 %v3126_v48 }
 0x4f3   :  { %1469 = vmatmul.f32.vlgmr.msrb.gmra.mxu2 %v1366_v44  ;;  %1630 = vmatmul.f32.vlgmr.msra.gmra.mxu3 %v1553_v33  ;;  %v1863_v33 = vld [vmem:[#allocation2 + $0x1d] sm:$0x1] }
 0x4f4   :  { %1722 = vmatpush.msrb.mxu2 %v3126_v48  ;;  %1846 = vmatpush.msra.mxu3 %v3126_v48  ;;  %v1880_v37 = vrot.slane %v1863_v33, 5 }
 0x4f5   :  { %1654 = vmatmul.f32.vlgmr.msrb.gmra.mxu0 %v1549_v29 }
 0x4f7   :  { %1676 = vmatmul.f32.vlgmr.msrb.gmra.mxu1 %v1549_v29  ;;  %v1862_v29 = vld [vmem:[#allocation2 + $0x15] sm:$0x1] }
 0x4f8   :  { %v1878_v34 = vrot.slane %v1862_v29, 6 }
 0x4fa   :  { %v1879_v41 = vsel %vm87_vm1, %v1878_v34, %v1877_v36 }
 0x4fb   :  { %1606 = vmatmul.f32.vlgmr.msra.gmra.mxu2 %v1552_v31  ;;  %v1881_v44 = vsel %vm90_vm2, %v1880_v37, %v1879_v41 }
 0x4fc   :  { %1824 = vmatpush.msra.mxu2 %v3134_v51  ;;  %v1883_v47 = vsel %vm93_vm3, %v1882_v42, %v1881_v44 }
 0x562   :  { %v1422_v55 = vpop.f32.mrf.mxu0 }
 0x564   :  { %v1446_v59 = vpop.f32.mrf.mxu1 }
 0x566   :  { %v1398_v53 = vpop.f32.mrf.mxu3 }
 0x56a   :  { %v1557_v61 = vpop.f32.mrf.mxu0 }
 0x56c   :  { %v1583_v2 = vpop.f32.mrf.mxu1 }
 0x56d   :  { %v1584_v5 = vadd.f32 %v1583_v2, %v1557_v61 }
 0x56e   :  { %v1372_v56 = vpop.f32.mrf.mxu2  ;;  %v1492_v62 = vpop.f32.mrf.mxu3 }
 0x56f   :  { %v1399_v57 = vadd.f32 %v1398_v53, %v1372_v56  ;;  %v1885_v53 = vsel %vm96_vm4, %v1884_v45, %v1883_v47 }
 0x570   :  { %v1887_v56 = vsel %vm99_vm5, %v1886_v49, %v1885_v53 }
 0x571   :  { %v1423_v58 = vadd.f32 %v1422_v55, %v1399_v57  ;;  %v1888_v55 = vrot.slane %v1867_v46, 1 }
 0x572   :  { %v1655_v10 = vpop.f32.mrf.mxu0 }
 0x573   :  { %v1447_v60 = vadd.f32 %v1446_v59, %v1423_v58  ;;  %v1889_v57 = vsel %vm102_vm6, %v1888_v55, %v1887_v56  ;;  %v2218_v55 = vld [vmem:[#allocation2 + $0xe] sm:$0x1] }
 0x574   :  { %v1677_v13 = vpop.f32.mrf.mxu1  ;;  %v1906_v58 = vand.u32 4294901760, %v1889_v57 }
 0x576   :  { %v1470_v63 = vpop.f32.mrf.mxu2  ;;  %v1631_v7 = vpop.f32.mrf.mxu3  ;;  %1907 = vmatpush.xpose.msrb.mxu0 %v1906_v58 }
 0x577   :  { %v1471_v0 = vadd.f32 %v1470_v63, %v1447_v60  ;;  %v1909_v60 = vsub.f32 %v1889_v57, %v1906_v58  ;;  %v2219_v57 = vld [vmem:[#allocation2 + $0x16] sm:$0x1] }
 0x579   :  { %v1493_v1 = vadd.f32 %v1492_v62, %v1471_v0  ;;  %v1910_v62 = vand.u32 4294901760, %v1909_v60 }
 0x57b   :  { %v1495_v3 = vmul.f32 %v1493_v1, %v3159_v52  ;;  %v1911_v0 = vsub.f32 %v1909_v60, %v1910_v62 }
 0x57d   :  { %v1496_v4 = vrot.slane %v1495_v3, 4  ;;  %v1912_v2 = vand.u32 4294901760, %v1911_v0 }
 0x57e   :  { %v1607_v6 = vpop.f32.mrf.mxu2 }
 0x57f   :  { %v1497_v8 = vadd.f32 %v1496_v4, %v1495_v3  ;;  %v1608_v9 = vadd.f32 %v1607_v6, %v1584_v5  ;;  %1937 = vmatpush.xpose.msrb.mxu1 %v1912_v2 }
 0x581   :  { %v1498_v11 = vrot.slane %v1497_v8, 2  ;;  %v1632_v12 = vadd.f32 %v1631_v7, %v1608_v9 }
 0x583   :  { %v1499_v14 = vadd.f32 %v1498_v11, %v1497_v8  ;;  %v1656_v15 = vadd.f32 %v1655_v10, %v1632_v12 }
 0x585   :  { %v1500_v16 = vrot.slane %v1499_v14, 1  ;;  %v1678_v17 = vadd.f32 %v1677_v13, %v1656_v15 }
 0x587   :  { %v1501_v18 = vadd.f32 %v1500_v16, %v1499_v14  ;;  %v1680_v19 = vmul.f32 %v3119_v40, %v1678_v17 }
 0x589   :  { %1502 = vst [vmem:[#allocation8 + $0x3] sm:$0x1] %v1501_v18  ;;  %v1681_v20 = vsel %vm252_vm8, %v1680_v19, 0.0 }
 0x58a   :  { %1682 = vadd.xlane.f32.xlu2 %v1681_v20  ;;  %v1684_v21 = vrot.slane %v1681_v20, 4 }
 0x58c   :  { %v1685_v22 = vadd.f32 %v1684_v21, %v1681_v20 }
 0x58e   :  { %v1686_v23 = vrot.slane %v1685_v22, 2 }
 0x590   :  { %v1687_v24 = vadd.f32 %v1686_v23, %v1685_v22 }
 0x592   :  { %v1688_v25 = vrot.slane %v1687_v24, 1 }
 0x594   :  { %v1689_v26 = vadd.f32 %v1688_v25, %v1687_v24 }
 0x5fd   :  { %v1683_v28 = vpop.xlane.xlu2 %1682 }
 0x5fe   :  { %v1690_v31 = vmul.f32 %v1689_v26, %v1683_v28 }
 0x600   :  { %v1691_v38 = vmax.f32 %v1690_v31, 1e-18 }
 0x602   :  { %2965 = vrsqrt.f32 %v1691_v38  ;;  %vm1698_vm14 = vweird.f32 %v1691_v38 }
 0x608   :  { %v2966_v59 = vpop.eup %2965 }
 0x609   :  { %v1693_v61 = vmul.f32 %v2966_v59, %v1691_v38  ;;  %vm1699_vm13 = vweird.f32 %v2966_v59 }
 0x60a   :  { %vm1700_vm15 = vmor %vm1698_vm14, %vm1699_vm13 }
 0x60b   :  { %v1694_v63 = vmul.f32 %v2966_v59, %v1693_v61  ;;  %v2220_v61 = vld [vmem:[#allocation2 + $0x1e] sm:$0x1] }
 0x60d   :  { %v1695_v1 = vmul.f32 0.5, %v1694_v63  ;;  %v2221_v63 = vld [vmem:[#allocation2 + $0x26] sm:$0x1] }
 0x60f   :  { %v1696_v3 = vsub.f32 1.5, %v1695_v1  ;;  %v2237_v1 = vrot.slane %v2220_v61, 5 }
 0x611   :  { %v1697_v4 = vmul.f32 %v2966_v59, %v1696_v3  ;;  %v2222_v3 = vld [vmem:[#allocation2 + $0x2e] sm:$0x1] }
 0x613   :  { %v1701_v5 = vsel %vm1700_vm15, %v2966_v59, %v1697_v4 }
 0x614   :  { %v1702_v6 = vmul.f32 %v1701_v5, %v1678_v17  ;;  %v2239_v5 = vrot.slane %v2221_v63, 4 }
 0x616   :  { %v1704_v7 = vsel %vm252_vm8, %v1702_v6, 0  ;;  %v2223_v6 = vld [vmem:[#allocation2 + $0x36] sm:$0x1] }
 0x617   :  { %v1723_v8 = vand.u32 4294901760, %v1704_v7 }
 0x619   :  { %1754 = vmatmul.f32.vlgmr.msrb.gmra.mxu3 %v1723_v8  ;;  %v1724_v9 = vsub.f32 %v1704_v7, %v1723_v8 }
 0x61a   :  { %1983 = vmatpush.xpose.msrb.mxu3 %v1906_v58 }
 0x61b   :  { %1778 = vmatmul.f32.vlgmr.msra.gmra.mxu0 %v1724_v9  ;;  %v1725_v10 = vand.u32 4294901760, %v1724_v9 }
 0x61c   :  { %2009 = vmatpush.xpose.msra.mxu0 %v1910_v62 }
 0x61d   :  { %1802 = vmatmul.f32.vlgmr.msra.gmra.mxu1 %v1725_v10  ;;  %v1726_v11 = vsub.f32 %v1724_v9, %v1725_v10  ;;  %v2224_v9 = vld [vmem:[#allocation2 + $0x3e] sm:$0x1] }
 0x61e   :  { %2031 = vmatpush.xpose.msra.mxu1 %v1906_v58 }
 0x61f   :  { %v1727_v12 = vand.u32 4294901760, %v1726_v11  ;;  %v2243_v11 = vrot.slane %v2223_v6, 2 }
 0x621   :  { %1728 = vmatmul.f32.vlgmr.msrb.gmra.mxu2 %v1727_v12  ;;  %1848 = vmatmul.f32.vlgmr.msra.gmra.mxu3 %v1723_v8 }
 0x622   :  { %1960 = vmatpush.xpose.msrb.mxu2 %v1909_v60  ;;  %2109 = vmatpush.msra.mxu3 %v3140_v54 }
 0x623   :  { %1913 = vmatmul.f32.vlgmr.msrb.gmra.mxu0 %v1912_v2 }
 0x624   :  { %2132 = vmatpush.msrb.mxu0 %v3129_v50 }
 0x625   :  { %1939 = vmatmul.f32.vlgmr.msrb.gmra.mxu1 %v1906_v58 }
 0x626   :  { %2155 = vmatpush.msrb.mxu1 %v3126_v48 }
 0x629   :  { %1826 = vmatmul.f32.vlgmr.msra.gmra.mxu2 %v1723_v8  ;;  %1987 = vmatmul.f32.vlgmr.msrb.gmra.mxu3 %v1910_v62  ;;  %v2235_v62 = vrot.slane %v2219_v57, 6  ;;  %v2241_v8 = vrot.slane %v2222_v3, 3 }
 0x62a   :  { %2079 = vmatpush.msra.mxu2 %v3126_v48  ;;  %2203 = vmatpush.msrb.mxu3 %v3126_v48 }
 0x62b   :  { %2011 = vmatmul.f32.vlgmr.msra.gmra.mxu0 %v1906_v58 }
 0x62d   :  { %2033 = vmatmul.f32.vlgmr.msra.gmra.mxu1 %v1906_v58  ;;  %v2233_v58 = vrot.slane %v2218_v55, 7 }
 0x631   :  { %1963 = vmatmul.f32.vlgmr.msrb.gmra.mxu2 %v1909_v60  ;;  %v2217_v60 = vld [vmem:[#allocation2 + $0x6] sm:$0x1] }
 0x632   :  { %2181 = vmatpush.msrb.mxu2 %v3134_v51  ;;  %v2234_v0 = vsel %vm84_vm0, %v2233_v58, %v2217_v60 }
 0x633   :  { %v2236_v4 = vsel %vm87_vm1, %v2235_v62, %v2234_v0 }
 0x634   :  { %v2238_v7 = vsel %vm90_vm2, %v2237_v1, %v2236_v4 }
 0x635   :  { %v2240_v10 = vsel %vm93_vm3, %v2239_v5, %v2238_v7 }
 0x636   :  { %v2242_v12 = vsel %vm96_vm4, %v2241_v8, %v2240_v10 }
 0x698   :  { %v1779_v14 = vpop.f32.mrf.mxu0 }
 0x69a   :  { %v1803_v18 = vpop.f32.mrf.mxu1 }
 0x69c   :  { %v1755_v13 = vpop.f32.mrf.mxu3 }
 0x6a0   :  { %v1914_v20 = vpop.f32.mrf.mxu0 }
 0x6a2   :  { %v1940_v25 = vpop.f32.mrf.mxu1 }
 0x6a3   :  { %v1941_v28 = vadd.f32 %v1940_v25, %v1914_v20 }
 0x6a4   :  { %v1729_v15 = vpop.f32.mrf.mxu2  ;;  %v1849_v21 = vpop.f32.mrf.mxu3 }
 0x6a5   :  { %v1756_v16 = vadd.f32 %v1755_v13, %v1729_v15  ;;  %v2245_v13 = vrot.slane %v2224_v9, 1 }
 0x6a7   :  { %v1780_v17 = vadd.f32 %v1779_v14, %v1756_v16  ;;  %v2244_v14 = vsel %vm99_vm5, %v2243_v11, %v2242_v12 }
 0x6a8   :  { %v2012_v33 = vpop.f32.mrf.mxu0  ;;  %v2246_v15 = vsel %vm102_vm6, %v2245_v13, %v2244_v14  ;;  %v2575_v14 = vld [vmem:[#allocation2 + $0xf] sm:$0x1] }
 0x6a9   :  { %v1804_v19 = vadd.f32 %v1803_v18, %v1780_v17  ;;  %v2263_v16 = vand.u32 4294901760, %v2246_v15 }
 0x6aa   :  { %v2034_v36 = vpop.f32.mrf.mxu1 }
 0x6ab   :  { %v2266_v18 = vsub.f32 %v2246_v15, %v2263_v16  ;;  %2264 = vmatpush.xpose.msra.mxu0 %v2263_v16 }
 0x6ac   :  { %v1827_v22 = vpop.f32.mrf.mxu2  ;;  %v1988_v30 = vpop.f32.mrf.mxu3 }
 0x6ad   :  { %v1828_v23 = vadd.f32 %v1827_v22, %v1804_v19  ;;  %v2267_v20 = vand.u32 4294901760, %v2266_v18 }
 0x6af   :  { %v1850_v24 = vadd.f32 %v1849_v21, %v1828_v23  ;;  %v2268_v22 = vsub.f32 %v2266_v18, %v2267_v20 }
 0x6b1   :  { %v1852_v26 = vmul.f32 %v1850_v24, %v3159_v52  ;;  %v2269_v24 = vand.u32 4294901760, %v2268_v22  ;;  %v2578_v22 = vld [vmem:[#allocation2 + $0x27] sm:$0x1] }
 0x6b3   :  { %v1853_v27 = vrot.slane %v1852_v26, 4  ;;  %2294 = vmatpush.xpose.msra.mxu1 %v2269_v24 }
 0x6b4   :  { %v1964_v29 = vpop.f32.mrf.mxu2 }
 0x6b5   :  { %v1854_v31 = vadd.f32 %v1853_v27, %v1852_v26  ;;  %v1965_v32 = vadd.f32 %v1964_v29, %v1941_v28 }
 0x6b7   :  { %v1855_v34 = vrot.slane %v1854_v31, 2  ;;  %v1989_v35 = vadd.f32 %v1988_v30, %v1965_v32 }
 0x6b9   :  { %v1856_v37 = vadd.f32 %v1855_v34, %v1854_v31  ;;  %v2013_v38 = vadd.f32 %v2012_v33, %v1989_v35 }
 0x6bb   :  { %v1857_v39 = vrot.slane %v1856_v37, 1  ;;  %v2035_v41 = vadd.f32 %v2034_v36, %v2013_v38 }
 0x6bd   :  { %v1858_v42 = vadd.f32 %v1857_v39, %v1856_v37  ;;  %v2037_v43 = vmul.f32 %v3119_v40, %v2035_v41 }
 0x6bf   :  { %1859 = vst [vmem:[#allocation8 + $0x4] sm:$0x1] %v1858_v42  ;;  %v2038_v52 = vsel %vm252_vm8, %v2037_v43, 0.0 }
 0x6c0   :  { %2039 = vadd.xlane.f32.xlu2 %v2038_v52  ;;  %v2041_v44 = vrot.slane %v2038_v52, 4 }
 0x6c2   :  { %v2042_v45 = vadd.f32 %v2041_v44, %v2038_v52 }
 0x6c4   :  { %v2043_v46 = vrot.slane %v2042_v45, 2 }
 0x6c6   :  { %v2044_v47 = vadd.f32 %v2043_v46, %v2042_v45 }
 0x6c8   :  { %v2045_v49 = vrot.slane %v2044_v47, 1 }
 0x6ca   :  { %v2046_v53 = vadd.f32 %v2045_v49, %v2044_v47  ;;  %v3246_v49 = vld [vmem:[#allocation7] sm:$0xff] }
 0x733   :  { %v2040_v56 = vpop.xlane.xlu2 %2039 }
 0x734   :  { %v2047_v59 = vmul.f32 %v2046_v53, %v2040_v56 }
 0x736   :  { %v2048_v2 = vmax.f32 %v2047_v59, 1e-18 }
 0x738   :  { %2967 = vrsqrt.f32 %v2048_v2  ;;  %vm2055_vm9 = vweird.f32 %v2048_v2 }
 0x73e   :  { %v2968_v17 = vpop.eup %2967 }
 0x73f   :  { %v2050_v19 = vmul.f32 %v2968_v17, %v2048_v2  ;;  %vm2056_vm7 = vweird.f32 %v2968_v17 }
 0x740   :  { %vm2057_vm10 = vmor %vm2055_vm9, %vm2056_vm7 }
 0x741   :  { %v2051_v21 = vmul.f32 %v2968_v17, %v2050_v19  ;;  %v2574_v19 = vld [vmem:[#allocation2 + $0x7] sm:$0x1] }
 0x743   :  { %v2052_v23 = vmul.f32 0.5, %v2051_v21 }
 0x745   :  { %v2053_v25 = vsub.f32 1.5, %v2052_v23 }
 0x747   :  { %v2054_v26 = vmul.f32 %v2968_v17, %v2053_v25 }
 0x749   :  { %v2058_v27 = vsel %vm2057_vm10, %v2968_v17, %v2054_v26  ;;  %v2590_v17 = vrot.slane %v2575_v14, 7  ;;  %v2579_v26 = vld [vmem:[#allocation2 + $0x2f] sm:$0x1] }
 0x74a   :  { %v2059_v28 = vmul.f32 %v2058_v27, %v2035_v41 }
 0x74b   :  { %v2591_v23 = vsel %vm84_vm0, %v2590_v17, %v2574_v19 }
 0x74c   :  { %v2061_v29 = vsel %vm252_vm8, %v2059_v28, 0  ;;  %v2596_v28 = vrot.slane %v2578_v22, 4 }
 0x74d   :  { %v2080_v30 = vand.u32 4294901760, %v2061_v29 }
 0x74f   :  { %2111 = vmatmul.f32.vlgmr.msra.gmra.mxu3 %v2080_v30  ;;  %v2081_v31 = vsub.f32 %v2061_v29, %v2080_v30  ;;  %v2580_v29 = vld [vmem:[#allocation2 + $0x37] sm:$0x1] }
 0x750   :  { %2340 = vmatpush.xpose.msra.mxu3 %v2263_v16 }
 0x751   :  { %2135 = vmatmul.f32.vlgmr.msrb.gmra.mxu0 %v2081_v31  ;;  %v2082_v32 = vand.u32 4294901760, %v2081_v31 }
 0x752   :  { %2366 = vmatpush.xpose.msrb.mxu0 %v2267_v20 }
 0x753   :  { %2159 = vmatmul.f32.vlgmr.msrb.gmra.mxu1 %v2082_v32  ;;  %v2083_v33 = vsub.f32 %v2081_v31, %v2082_v32  ;;  %v2598_v31 = vrot.slane %v2579_v26, 3  ;;  %v2581_v32 = vld [vmem:[#allocation2 + $0x3f] sm:$0x1] }
 0x754   :  { %2388 = vmatpush.xpose.msrb.mxu1 %v2263_v16 }
 0x755   :  { %v2084_v34 = vand.u32 4294901760, %v2083_v33 }
 0x757   :  { %2085 = vmatmul.f32.vlgmr.msra.gmra.mxu2 %v2084_v34  ;;  %2205 = vmatmul.f32.vlgmr.msrb.gmra.mxu3 %v2080_v30  ;;  %v2600_v34 = vrot.slane %v2580_v29, 2 }
 0x758   :  { %2317 = vmatpush.xpose.msra.mxu2 %v2266_v18  ;;  %2466 = vmatpush.msrb.mxu3 %v3140_v54 }
 0x759   :  { %2270 = vmatmul.f32.vlgmr.msra.gmra.mxu0 %v2269_v24 }
 0x75a   :  { %2489 = vmatpush.msra.mxu0 %v3129_v50 }
 0x75b   :  { %2296 = vmatmul.f32.vlgmr.msra.gmra.mxu1 %v2263_v16 }
 0x75c   :  { %2512 = vmatpush.msra.mxu1 %v3126_v48 }
 0x75f   :  { %2183 = vmatmul.f32.vlgmr.msrb.gmra.mxu2 %v2080_v30  ;;  %2344 = vmatmul.f32.vlgmr.msra.gmra.mxu3 %v2267_v20  ;;  %v2577_v20 = vld [vmem:[#allocation2 + $0x1f] sm:$0x1] }
 0x760   :  { %2436 = vmatpush.msrb.mxu2 %v3126_v48  ;;  %2560 = vmatpush.msra.mxu3 %v3126_v48  ;;  %v2594_v24 = vrot.slane %v2577_v20, 5 }
 0x761   :  { %2368 = vmatmul.f32.vlgmr.msrb.gmra.mxu0 %v2263_v16 }
 0x763   :  { %2390 = vmatmul.f32.vlgmr.msrb.gmra.mxu1 %v2263_v16  ;;  %v2576_v16 = vld [vmem:[#allocation2 + $0x17] sm:$0x1] }
 0x764   :  { %v2592_v21 = vrot.slane %v2576_v16, 6 }
 0x766   :  { %v2593_v27 = vsel %vm87_vm1, %v2592_v21, %v2591_v23 }
 0x767   :  { %2320 = vmatmul.f32.vlgmr.msra.gmra.mxu2 %v2266_v18  ;;  %v2595_v30 = vsel %vm90_vm2, %v2594_v24, %v2593_v27 }
 0x768   :  { %2538 = vmatpush.msra.mxu2 %v3134_v51  ;;  %v2597_v33 = vsel %vm93_vm3, %v2596_v28, %v2595_v30 }
 0x7ce   :  { %v2136_v36 = vpop.f32.mrf.mxu0 }
 0x7d0   :  { %v2160_v41 = vpop.f32.mrf.mxu1 }
 0x7d2   :  { %v2112_v35 = vpop.f32.mrf.mxu3 }
 0x7d6   :  { %v2271_v43 = vpop.f32.mrf.mxu0 }
 0x7d8   :  { %v2297_v47 = vpop.f32.mrf.mxu1 }
 0x7d9   :  { %v2298_v56 = vadd.f32 %v2297_v47, %v2271_v43 }
 0x7da   :  { %v2086_v37 = vpop.f32.mrf.mxu2  ;;  %v2206_v52 = vpop.f32.mrf.mxu3 }
 0x7db   :  { %v2113_v38 = vadd.f32 %v2112_v35, %v2086_v37  ;;  %v2599_v35 = vsel %vm96_vm4, %v2598_v31, %v2597_v33 }
 0x7dc   :  { %v2601_v37 = vsel %vm99_vm5, %v2600_v34, %v2599_v35 }
 0x7dd   :  { %v2137_v39 = vadd.f32 %v2136_v36, %v2113_v38  ;;  %v2602_v36 = vrot.slane %v2581_v32, 1 }
 0x7de   :  { %v2369_v61 = vpop.f32.mrf.mxu0 }
 0x7df   :  { %v2161_v42 = vadd.f32 %v2160_v41, %v2137_v39  ;;  %v2603_v38 = vsel %vm102_vm6, %v2602_v36, %v2601_v37 }
 0x7e0   :  { %v2391_v0 = vpop.f32.mrf.mxu1  ;;  %v2620_v39 = vand.u32 4294901760, %v2603_v38 }
 0x7e2   :  { %v2184_v44 = vpop.f32.mrf.mxu2  ;;  %v2345_v58 = vpop.f32.mrf.mxu3  ;;  %2621 = vmatpush.xpose.msrb.mxu0 %v2620_v39 }
 0x7e3   :  { %v2185_v45 = vadd.f32 %v2184_v44, %v2161_v42  ;;  %v2623_v42 = vsub.f32 %v2603_v38, %v2620_v39 }
 0x7e5   :  { %v2207_v46 = vadd.f32 %v2206_v52, %v2185_v45  ;;  %v2624_v52 = vand.u32 4294901760, %v2623_v42 }
 0x7e7   :  { %v2209_v53 = vmul.f32 %v3246_v49, %v2207_v46  ;;  %v2625_v45 = vsub.f32 %v2623_v42, %v2624_v52 }
 0x7e9   :  { %v2210_v55 = vrot.slane %v2209_v53, 4  ;;  %v2626_v47 = vand.u32 4294901760, %v2625_v45 }
 0x7ea   :  { %v2321_v57 = vpop.f32.mrf.mxu2 }
 0x7eb   :  { %v2211_v59 = vadd.f32 %v2210_v55, %v2209_v53  ;;  %v2322_v60 = vadd.f32 %v2321_v57, %v2298_v56  ;;  %2651 = vmatpush.xpose.msrb.mxu1 %v2626_v47 }
 0x7ed   :  { %v2212_v62 = vrot.slane %v2211_v59, 2  ;;  %v2346_v63 = vadd.f32 %v2345_v58, %v2322_v60 }
 0x7ef   :  { %v2213_v1 = vadd.f32 %v2212_v62, %v2211_v59  ;;  %v2370_v2 = vadd.f32 %v2369_v61, %v2346_v63 }
 0x7f1   :  { %v2214_v3 = vrot.slane %v2213_v1, 1  ;;  %v2392_v4 = vadd.f32 %v2391_v0, %v2370_v2 }
 0x7f3   :  { %v2215_v5 = vadd.f32 %v2214_v3, %v2213_v1  ;;  %v2394_v6 = vmul.f32 %v3119_v40, %v2392_v4 }
 0x7f5   :  { %2216 = vst [vmem:[#allocation8 + $0x5] sm:$0x1] %v2215_v5  ;;  %v2395_v7 = vsel %vm252_vm8, %v2394_v6, 0.0 }
 0x7f6   :  { %2396 = vadd.xlane.f32.xlu0 %v2395_v7  ;;  %v2398_v8 = vrot.slane %v2395_v7, 4 }
 0x7f8   :  { %v2399_v9 = vadd.f32 %v2398_v8, %v2395_v7 }
 0x7fa   :  { %v2400_v10 = vrot.slane %v2399_v9, 2 }
 0x7fc   :  { %v2401_v11 = vadd.f32 %v2400_v10, %v2399_v9 }
 0x7fe   :  { %v2402_v12 = vrot.slane %v2401_v11, 1 }
 0x800   :  { %v2403_v13 = vadd.f32 %v2402_v12, %v2401_v11 }
 0x869   :  { %v2397_v15 = vpop.xlane.xlu0 %2396 }
 0x86a   :  { %v2404_v18 = vmul.f32 %v2403_v13, %v2397_v15 }
 0x86c   :  { %v2405_v25 = vmax.f32 %v2404_v18, 1e-18 }
 0x86e   :  { %2969 = vrsqrt.f32 %v2405_v25  ;;  %vm2412_vm1 = vweird.f32 %v2405_v25 }
 0x874   :  { %v2970_v41 = vpop.eup %2969 }
 0x875   :  { %v2407_v43 = vmul.f32 %v2970_v41, %v2405_v25  ;;  %vm2413_vm0 = vweird.f32 %v2970_v41 }
 0x876   :  { %vm2414_vm2 = vmor %vm2412_vm1, %vm2413_vm0 }
 0x877   :  { %v2408_v44 = vmul.f32 %v2970_v41, %v2407_v43 }
 0x879   :  { %v2409_v46 = vmul.f32 0.5, %v2408_v44 }
 0x87b   :  { %v2410_v53 = vsub.f32 1.5, %v2409_v46 }
 0x87d   :  { %v2411_v55 = vmul.f32 %v2970_v41, %v2410_v53 }
 0x87f   :  { %v2415_v56 = vsel %vm2414_vm2, %v2970_v41, %v2411_v55 }
 0x880   :  { %v2416_v57 = vmul.f32 %v2415_v56, %v2392_v4 }
 0x882   :  { %v2418_v58 = vsel %vm252_vm8, %v2416_v57, 0 }
 0x883   :  { %v2437_v59 = vand.u32 4294901760, %v2418_v58 }
 0x885   :  { %2468 = vmatmul.f32.vlgmr.msrb.gmra.mxu3 %v2437_v59  ;;  %v2438_v60 = vsub.f32 %v2418_v58, %v2437_v59 }
 0x886   :  { %2697 = vmatpush.xpose.msrb.mxu3 %v2620_v39 }
 0x887   :  { %2492 = vmatmul.f32.vlgmr.msra.gmra.mxu0 %v2438_v60  ;;  %v2439_v61 = vand.u32 4294901760, %v2438_v60 }
 0x888   :  { %2723 = vmatpush.xpose.msra.mxu0 %v2624_v52 }
 0x889   :  { %2516 = vmatmul.f32.vlgmr.msra.gmra.mxu1 %v2439_v61  ;;  %v2440_v62 = vsub.f32 %v2438_v60, %v2439_v61 }
 0x88a   :  { %2745 = vmatpush.xpose.msra.mxu1 %v2620_v39 }
 0x88b   :  { %v2441_v63 = vand.u32 4294901760, %v2440_v62 }
 0x88d   :  { %2442 = vmatmul.f32.vlgmr.msrb.gmra.mxu2 %v2441_v63  ;;  %2562 = vmatmul.f32.vlgmr.msra.gmra.mxu3 %v2437_v59 }
 0x88e   :  { %2674 = vmatpush.xpose.msrb.mxu2 %v2623_v42  ;;  %2823 = vmatpush.msra.mxu3 %v3140_v54 }
 0x88f   :  { %2627 = vmatmul.f32.vlgmr.msrb.gmra.mxu0 %v2626_v47 }
 0x890   :  { %2846 = vmatpush.msrb.mxu0 %v3129_v50 }
 0x891   :  { %2653 = vmatmul.f32.vlgmr.msrb.gmra.mxu1 %v2620_v39 }
 0x892   :  { %2869 = vmatpush.msrb.mxu1 %v3126_v48 }
 0x895   :  { %2540 = vmatmul.f32.vlgmr.msra.gmra.mxu2 %v2437_v59  ;;  %2701 = vmatmul.f32.vlgmr.msrb.gmra.mxu3 %v2624_v52 }
 0x896   :  { %2793 = vmatpush.msra.mxu2 %v3126_v48  ;;  %2917 = vmatpush.msrb.mxu3 %v3126_v48 }
 0x897   :  { %2725 = vmatmul.f32.vlgmr.msra.gmra.mxu0 %v2620_v39 }
 0x899   :  { %2747 = vmatmul.f32.vlgmr.msra.gmra.mxu1 %v2620_v39 }
 0x89d   :  { %2677 = vmatmul.f32.vlgmr.msrb.gmra.mxu2 %v2623_v42 }
 0x89e   :  { %2895 = vmatpush.msrb.mxu2 %v3134_v51 }
 0x904   :  { %v2493_v1 = vpop.f32.mrf.mxu0 }
 0x906   :  { %v2517_v50 = vpop.f32.mrf.mxu1 }
 0x908   :  { %v2469_v0 = vpop.f32.mrf.mxu3 }
 0x90c   :  { %v2628_v5 = vpop.f32.mrf.mxu0 }
 0x90e   :  { %v2654_v10 = vpop.f32.mrf.mxu1 }
 0x90f   :  { %v2655_v12 = vadd.f32 %v2654_v10, %v2628_v5 }
 0x910   :  { %v2443_v54 = vpop.f32.mrf.mxu2  ;;  %v2563_v6 = vpop.f32.mrf.mxu3 }
 0x911   :  { %v2470_v2 = vadd.f32 %v2469_v0, %v2443_v54 }
 0x913   :  { %v2494_v3 = vadd.f32 %v2493_v1, %v2470_v2 }
 0x914   :  { %v2726_v16 = vpop.f32.mrf.mxu0 }
 0x915   :  { %v2518_v4 = vadd.f32 %v2517_v50, %v2494_v3 }
 0x916   :  { %v2748_v19 = vpop.f32.mrf.mxu1 }
 0x918   :  { %v2541_v7 = vpop.f32.mrf.mxu2  ;;  %v2702_v14 = vpop.f32.mrf.mxu3 }
 0x919   :  { %v2542_v8 = vadd.f32 %v2541_v7, %v2518_v4 }
 0x91b   :  { %v2564_v9 = vadd.f32 %v2563_v6, %v2542_v8 }
 0x91d   :  { %v2566_v48 = vmul.f32 %v3246_v49, %v2564_v9 }
 0x91f   :  { %v2567_v11 = vrot.slane %v2566_v48, 4 }
 0x920   :  { %v2678_v13 = vpop.f32.mrf.mxu2 }
 0x921   :  { %v2568_v51 = vadd.f32 %v2567_v11, %v2566_v48  ;;  %v2679_v15 = vadd.f32 %v2678_v13, %v2655_v12 }
 0x923   :  { %v2569_v17 = vrot.slane %v2568_v51, 2  ;;  %v2703_v18 = vadd.f32 %v2702_v14, %v2679_v15 }
 0x925   :  { %v2570_v20 = vadd.f32 %v2569_v17, %v2568_v51  ;;  %v2727_v21 = vadd.f32 %v2726_v16, %v2703_v18 }
 0x927   :  { %v2571_v22 = vrot.slane %v2570_v20, 1  ;;  %v2749_v23 = vadd.f32 %v2748_v19, %v2727_v21 }
 0x929   :  { %v2572_v24 = vadd.f32 %v2571_v22, %v2570_v20  ;;  %v2751_v25 = vmul.f32 %v3119_v40, %v2749_v23 }
 0x92b   :  { %2573 = vst [vmem:[#allocation8 + $0x6] sm:$0x1] %v2572_v24  ;;  %v2752_v26 = vsel %vm252_vm8, %v2751_v25, 0.0 }
 0x92c   :  { %2753 = vadd.xlane.f32.xlu1 %v2752_v26  ;;  %v2755_v27 = vrot.slane %v2752_v26, 4 }
 0x92e   :  { %v2756_v28 = vadd.f32 %v2755_v27, %v2752_v26 }
 0x930   :  { %v2757_v29 = vrot.slane %v2756_v28, 2 }
 0x932   :  { %v2758_v30 = vadd.f32 %v2757_v29, %v2756_v28 }
 0x934   :  { %v2759_v31 = vrot.slane %v2758_v30, 1 }
 0x936   :  { %v2760_v32 = vadd.f32 %v2759_v31, %v2758_v30 }
 0x99f   :  { %v2754_v33 = vpop.xlane.xlu1 %2753 }
 0x9a0   :  { %v2761_v34 = vmul.f32 %v2760_v32, %v2754_v33 }
 0x9a2   :  { %v2762_v35 = vmax.f32 %v2761_v34, 1e-18 }
 0x9a4   :  { %2971 = vrsqrt.f32 %v2762_v35  ;;  %vm2769_vm4 = vweird.f32 %v2762_v35 }
 0x9aa   :  { %v2972_v36 = vpop.eup %2971 }
 0x9ab   :  { %v2764_v37 = vmul.f32 %v2972_v36, %v2762_v35  ;;  %vm2770_vm3 = vweird.f32 %v2972_v36 }
 0x9ac   :  { %vm2771_vm5 = vmor %vm2769_vm4, %vm2770_vm3 }
 0x9ad   :  { %v2765_v38 = vmul.f32 %v2972_v36, %v2764_v37 }
 0x9af   :  { %v2766_v39 = vmul.f32 0.5, %v2765_v38 }
 0x9b1   :  { %v2767_v41 = vsub.f32 1.5, %v2766_v39 }
 0x9b3   :  { %v2768_v40 = vmul.f32 %v2972_v36, %v2767_v41 }
 0x9b5   :  { %v2772_v42 = vsel %vm2771_vm5, %v2972_v36, %v2768_v40 }
 0x9b6   :  { %v2773_v43 = vmul.f32 %v2772_v42, %v2749_v23 }
 0x9b8   :  { %v2775_v52 = vsel %vm252_vm8, %v2773_v43, 0 }
 0x9b9   :  { %v2794_v44 = vand.u32 4294901760, %v2775_v52 }
 0x9bb   :  { %2825 = vmatmul.f32.vlgmr.msra.gmra.mxu3 %v2794_v44  ;;  %v2795_v45 = vsub.f32 %v2775_v52, %v2794_v44 }
 0x9bd   :  { %2849 = vmatmul.f32.vlgmr.msrb.gmra.mxu0 %v2795_v45  ;;  %v2796_v46 = vand.u32 4294901760, %v2795_v45 }
 0x9bf   :  { %2873 = vmatmul.f32.vlgmr.msrb.gmra.mxu1 %v2796_v46  ;;  %v2797_v47 = vsub.f32 %v2795_v45, %v2796_v46 }
 0x9c1   :  { %v2798_v53 = vand.u32 4294901760, %v2797_v47 }
 0x9c3   :  { %2799 = vmatmul.f32.vlgmr.msra.gmra.mxu2 %v2798_v53  ;;  %2919 = vmatmul.f32.vlgmr.msrb.gmra.mxu3 %v2794_v44 }
 0x9cb   :  { %2897 = vmatmul.f32.vlgmr.msrb.gmra.mxu2 %v2794_v44 }
 0xa3a   :  { %v2850_v58 = vpop.f32.mrf.mxu0 }
 0xa3c   :  { %v2874_v60 = vpop.f32.mrf.mxu1 }
 0xa3e   :  { %v2826_v55 = vpop.f32.mrf.mxu3 }
 0xa46   :  { %v2800_v56 = vpop.f32.mrf.mxu2  ;;  %v2920_v0 = vpop.f32.mrf.mxu3 }
 0xa47   :  { %v2827_v57 = vadd.f32 %v2826_v55, %v2800_v56 }
 0xa49   :  { %v2851_v59 = vadd.f32 %v2850_v58, %v2827_v57 }
 0xa4b   :  { %v2875_v61 = vadd.f32 %v2874_v60, %v2851_v59 }
 0xa4e   :  { %v2898_v62 = vpop.f32.mrf.mxu2 }
 0xa4f   :  { %v2899_v63 = vadd.f32 %v2898_v62, %v2875_v61 }
 0xa51   :  { %v2921_v1 = vadd.f32 %v2920_v0, %v2899_v63 }
 0xa53   :  { %v2923_v54 = vmul.f32 %v3246_v49, %v2921_v1 }
 0xa55   :  { %v2924_v2 = vrot.slane %v2923_v54, 4 }
 0xa57   :  { %v2925_v3 = vadd.f32 %v2924_v2, %v2923_v54 }
 0xa59   :  { %v2926_v50 = vrot.slane %v2925_v3, 2 }
 0xa5b   :  { %v2927_v4 = vadd.f32 %v2926_v50, %v2925_v3 }
 0xa5d   :  { %v2928_v5 = vrot.slane %v2927_v4, 1 }
 0xa5f   :  { %v2929_v6 = vadd.f32 %v2928_v5, %v2927_v4 }
 0xa61   :  { %2930 = vst [vmem:[#allocation8 + $0x7] sm:$0x1] %v2929_v6 }
 0xa62   :  { %2941 = dma.vmem_to_hbm [thread:$0]  %s2937_s2, 128, %s2939_s30, [#allocation4]  }
 0xa63   :  { %3074 = dma.done.wait [#allocation4], 128  }
 0xa64   :  { %3075 = vsyncadd [#allocation4], 4294967168 }
 0xa65   :  { %2946 = vsyncpa [#allocation3], 1 }
 0xa66   :  { %2947 = vsyncpa [#allocation6], 1 }
 0xa67   :  { %2948 = vsyncpa [#allocation4], 1 }

</bundles_post_ra>
